<compile_context>
chip_gen: v6e
topology: v6e:2x2x1
jax: 0.10.0
libtpu: 0.0.40
codegen_flags: <defaults>
</compile_context>

<pallas_src>
import math

import jax
import jax.numpy as jnp
from jax import lax
from jax.experimental import pallas as pl
from jax.experimental.pallas import tpu as pltpu

# ---------------- config (small mT5-ish decoder) ----------------
VOCAB = 64
D_MODEL = 32
N_HEADS = 4
D_KV = 8                    # d_model = n_heads * d_kv
D_INNER = N_HEADS * D_KV
D_FF = 64
N_LAYERS = 2
N_BUCKETS = 32
MAX_DIST = 128
EPS = 1e-6                  # T5LayerNorm epsilon
NEG_INF = -1e9
PAD_IDX = 0


# ---------------- in-kernel helpers ----------------
def _rms_scale(x):
    """T5LayerNorm without the gain (gain is folded into the next projection)."""
    var = jnp.mean(x * x, axis=-1, keepdims=True)
    return x * lax.rsqrt(var + EPS)


def _gelu_new(x):
    c = math.sqrt(2.0 / math.pi)
    return 0.5 * x * (1.0 + jnp.tanh(c * (x + 0.044715 * x * x * x)))


def _split_heads(x2d, batch, seqlen):
    # (batch*seqlen, H*dk) -> (H*batch, seqlen, dk); leading index = h*batch + b
    parts = [x2d[:, h * D_KV:(h + 1) * D_KV].reshape(batch, seqlen, D_KV)
             for h in range(N_HEADS)]
    return jnp.concatenate(parts, axis=0)


def _merge_heads(a, batch, seqlen):
    # (H*batch, seqlen, dk) -> (batch*seqlen, H*dk)
    parts = [a[h * batch:(h + 1) * batch].reshape(batch * seqlen, D_KV)
             for h in range(N_HEADS)]
    return jnp.concatenate(parts, axis=-1)


def _attend(q, k, v, bias):
    # T5 attention: no 1/sqrt(d_kv) scaling; additive bias (mask + position bias).
    s = jnp.einsum('bqd,bkd->bqk', q, k,
                   preferred_element_type=jnp.float32) + bias
    m = jnp.max(s, axis=-1, keepdims=True)
    e = jnp.exp(s - m)
    denom = jnp.sum(e, axis=-1, keepdims=True)
    p = e * pl.reciprocal(denom, approx=True)
    return jnp.einsum('bqk,bkd->bqd', p, v, preferred_element_type=jnp.float32)


# ---------------- fused decoder-stack kernel ----------------
def _decoder_kernel(x0_ref, enc_ref, pos_bias_ref, dec_mask_ref, enc_mask_ref,
                    final_ln_ref,
                    wqkv_ref, wo_ref, wcq_ref, wckv_ref, wco_ref, wwi_ref,
                    wwo_ref,
                    out_ref,
                    x_sc, sbias_sc, cbias_sc):
    layer = pl.program_id(0)
    B, T = dec_mask_ref.shape
    Te = enc_mask_ref.shape[1]

    # --- layer 0: load activations, build additive biases once (kept in VMEM) ---
    @pl.when(layer == 0)
    def _init():
        x_sc[...] = x0_ref[...]

        q_ids = lax.broadcasted_iota(jnp.int32, (T, T), 0)
        k_ids = lax.broadcasted_iota(jnp.int32, (T, T), 1)
        causal = k_ids <= q_ids                                  # (T, T)
        dec_keep = dec_mask_ref[...] > 0.5                       # (B, T)
        keep = causal[None, :, :] & dec_keep[:, None, :]         # (B, T, T)
        add = jnp.where(keep, 0.0, NEG_INF).astype(jnp.float32)
        full = pos_bias_ref[...][:, None, :, :] + add[None, :, :, :]  # (H,B,T,T)
        sbias_sc[...] = full.reshape(N_HEADS * B, T, T)

        enc_keep = enc_mask_ref[...] > 0.5                       # (B, Te)
        eadd = jnp.where(enc_keep, 0.0, NEG_INF).astype(jnp.float32)
        cbias_sc[...] = jnp.broadcast_to(
            eadd[None, :, None, :], (N_HEADS, B, T, Te)
        ).reshape(N_HEADS * B, T, Te)

    x = x_sc[...]                                                # (B*T, D)

    # --- self-attention block (RMSNorm gain folded into wqkv) ---
    ns = _rms_scale(x)
    qkv = jnp.dot(ns, wqkv_ref[0], preferred_element_type=jnp.float32)
    q = _split_heads(qkv[:, :D_INNER], B, T)
    k = _split_heads(qkv[:, D_INNER:2 * D_INNER], B, T)
    v = _split_heads(qkv[:, 2 * D_INNER:], B, T)
    a = _attend(q, k, v, sbias_sc[...])
    x = x + jnp.dot(_merge_heads(a, B, T), wo_ref[0],
                    preferred_element_type=jnp.float32)

    # --- cross-attention block (RMSNorm gain folded into wcq) ---
    nc = _rms_scale(x)
    q = _split_heads(
        jnp.dot(nc, wcq_ref[0], preferred_element_type=jnp.float32), B, T)
    ekv = jnp.dot(enc_ref[...], wckv_ref[0], preferred_element_type=jnp.float32)
    k = _split_heads(ekv[:, :D_INNER], B, Te)
    v = _split_heads(ekv[:, D_INNER:], B, Te)
    a = _attend(q, k, v, cbias_sc[...])
    x = x + jnp.dot(_merge_heads(a, B, T), wco_ref[0],
                    preferred_element_type=jnp.float32)

    # --- gated-GELU feed-forward block (RMSNorm gain folded into wwi) ---
    nf = _rms_scale(x)
    h = jnp.dot(nf, wwi_ref[0], preferred_element_type=jnp.float32)  # (B*T, 2F)
    g = _gelu_new(h[:, :D_FF]) * h[:, D_FF:]
    x = x + jnp.dot(g, wwo_ref[0], preferred_element_type=jnp.float32)

    x_sc[...] = x

    # --- final RMSNorm on the last layer ---
    @pl.when(layer == pl.num_programs(0) - 1)
    def _final():
        out_ref[...] = _rms_scale(x) * final_ln_ref[...]


def _decoder_call(x0, enc2d, pos_bias, dec_mask, enc_mask, final_ln, stacked):
    BT, D = x0.shape
    B, T = dec_mask.shape
    Te = enc_mask.shape[1]
    L = stacked["wqkv"].shape[0]

    const2 = lambda l: (0, 0)
    const3 = lambda l: (0, 0, 0)
    per_layer = lambda l: (l, 0, 0)

    grid_spec = pltpu.PrefetchScalarGridSpec(
        num_scalar_prefetch=0,
        grid=(L,),
        in_specs=[
            pl.BlockSpec((BT, D), const2),                    # embedded tokens
            pl.BlockSpec((B * Te, D), const2),                # encoder output
            pl.BlockSpec((N_HEADS, T, T), const3),            # rel position bias
            pl.BlockSpec((B, T), const2),                     # decoder pad mask
            pl.BlockSpec((B, Te), const2),                    # encoder mask
            pl.BlockSpec((1, D), const2),                     # final LN gain
            pl.BlockSpec((1, D, 3 * D_INNER), per_layer),     # wqkv (LN folded)
            pl.BlockSpec((1, D_INNER, D), per_layer),         # wo
            pl.BlockSpec((1, D, D_INNER), per_layer),         # wcq (LN folded)
            pl.BlockSpec((1, D, 2 * D_INNER), per_layer),     # wckv
            pl.BlockSpec((1, D_INNER, D), per_layer),         # wco
            pl.BlockSpec((1, D, 2 * D_FF), per_layer),        # wwi (LN folded)
            pl.BlockSpec((1, D_FF, D), per_layer),            # wwo
        ],
        out_specs=pl.BlockSpec((BT, D), const2),
        scratch_shapes=[
            pltpu.VMEM((BT, D), jnp.float32),                 # resident activations
            pltpu.VMEM((N_HEADS * B, T, T), jnp.float32),     # self-attn bias
            pltpu.VMEM((N_HEADS * B, T, Te), jnp.float32),    # cross-attn bias
        ],
    )
    return pl.pallas_call(
        _decoder_kernel,
        out_shape=jax.ShapeDtypeStruct((BT, D), jnp.float32),
        grid_spec=grid_spec,
        compiler_params=pltpu.CompilerParams(
            dimension_semantics=("arbitrary",)),   # layers are sequential
    )(x0, enc2d, pos_bias, dec_mask, enc_mask, final_ln,
      stacked["wqkv"], stacked["wo"], stacked["wcq"], stacked["wckv"],
      stacked["wco"], stacked["wwi"], stacked["wwo"])


# ---------------- params, weight stacking, relative position bias ----------------
def init_params(key):
    keys = jax.random.split(key, 2 + N_LAYERS)

    def nrm(k, shape, scale=0.02):
        return (scale * jax.random.normal(k, shape)).astype(jnp.float32)

    params = {
        "embed": nrm(keys[0], (VOCAB, D_MODEL), 1.0),
        "rel_bias": nrm(keys[1], (N_BUCKETS, N_HEADS), 0.1),
        "final_ln": jnp.ones((D_MODEL,), jnp.float32),
        "layers": [],
    }
    for l in range(N_LAYERS):
        lk = jax.random.split(keys[2 + l], 11)
        params["layers"].append({
            "ln_self": jnp.ones((D_MODEL,), jnp.float32),
            "q": nrm(lk[0], (D_MODEL, D_INNER)),
            "k": nrm(lk[1], (D_MODEL, D_INNER)),
            "v": nrm(lk[2], (D_MODEL, D_INNER)),
            "o": nrm(lk[3], (D_INNER, D_MODEL)),
            "ln_cross": jnp.ones((D_MODEL,), jnp.float32),
            "cq": nrm(lk[4], (D_MODEL, D_INNER)),
            "ck": nrm(lk[5], (D_MODEL, D_INNER)),
            "cv": nrm(lk[6], (D_MODEL, D_INNER)),
            "co": nrm(lk[7], (D_INNER, D_MODEL)),
            "ln_ff": jnp.ones((D_MODEL,), jnp.float32),
            "wi0": nrm(lk[8], (D_MODEL, D_FF)),
            "wi1": nrm(lk[9], (D_MODEL, D_FF)),
            "wo": nrm(lk[10], (D_FF, D_MODEL)),
        })
    return params


def stack_decoder_weights(params):
    """Fold RMSNorm gains into the following projections and stack per layer."""
    def fold(gain, w):       # rmsnorm(x)*gain @ W == rms_scale(x) @ (diag(gain) W)
        return gain[:, None] * w

    layers = params["layers"]
    return {
        "wqkv": jnp.stack([jnp.concatenate(
            [fold(ly["ln_self"], ly["q"]), fold(ly["ln_self"], ly["k"]),
             fold(ly["ln_self"], ly["v"])], axis=1) for ly in layers]),
        "wo": jnp.stack([ly["o"] for ly in layers]),
        "wcq": jnp.stack([fold(ly["ln_cross"], ly["cq"]) for ly in layers]),
        "wckv": jnp.stack([jnp.concatenate([ly["ck"], ly["cv"]], axis=1)
                           for ly in layers]),
        "wco": jnp.stack([ly["co"] for ly in layers]),
        "wwi": jnp.stack([jnp.concatenate(
            [fold(ly["ln_ff"], ly["wi0"]), fold(ly["ln_ff"], ly["wi1"])], axis=1)
            for ly in layers]),
        "wwo": jnp.stack([ly["wo"] for ly in layers]),
    }


def relative_position_bucket(rel_pos, num_buckets=N_BUCKETS, max_distance=MAX_DIST):
    # decoder -> bidirectional=False (HF T5Attention._relative_position_bucket)
    rel_pos = -jnp.minimum(rel_pos, 0)
    max_exact = num_buckets // 2
    is_small = rel_pos < max_exact
    rp = jnp.maximum(rel_pos, 1).astype(jnp.float32)
    rel_if_large = max_exact + (
        jnp.log(rp / max_exact) / math.log(max_distance / max_exact)
        * (num_buckets - max_exact)
    ).astype(jnp.int32)
    rel_if_large = jnp.minimum(rel_if_large, num_buckets - 1)
    return jnp.where(is_small, rel_pos, rel_if_large)


def compute_position_bias(rel_emb, qlen, klen):
    ctx = jnp.arange(qlen)[:, None]
    mem = jnp.arange(klen)[None, :]
    buckets = relative_position_bucket(mem - ctx)
    values = rel_emb[buckets]                       # (qlen, klen, H) gather (glue)
    return jnp.transpose(values, (2, 0, 1))         # (H, qlen, klen)


# ---------------- ParlaimT5Decoder.forward equivalent ----------------
def parlai_mt5_decoder_forward(params, input_ids, encoder_state, incr_state=None,
                               padding_idx=PAD_IDX):
    encoder_output, encoder_mask = encoder_state
    B, T = input_ids.shape
    Te = encoder_output.shape[1]

    # mask = input != padding_idx; mask[:, 0] = True
    mask = (input_ids != padding_idx).at[:, 0].set(True)

    # token embedding (gather stays in JAX glue)
    hidden = jnp.take(params["embed"], input_ids, axis=0)          # (B, T, D)
    pos_bias = compute_position_bias(params["rel_bias"], T, T)     # (H, T, T)

    stacked = stack_decoder_weights(params)
    x0 = hidden.reshape(B * T, D_MODEL).astype(jnp.float32)
    enc2d = encoder_output.reshape(B * Te, D_MODEL).astype(jnp.float32)

    out2d = _decoder_call(
        x0, enc2d, pos_bias,
        mask.astype(jnp.float32), encoder_mask.astype(jnp.float32),
        params["final_ln"].reshape(1, D_MODEL), stacked)

    # TODO(synk): incremental decoding state (past key/values) is passed through
    # unchanged, matching the reference module's `return (outputs[0], incr_state)`.
    return out2d.reshape(B, T, D_MODEL), incr_state


# ---------------- pure-JAX reference (for sanity check) ----------------
def reference_forward(params, input_ids, encoder_state, padding_idx=PAD_IDX):
    encoder_output, encoder_mask = encoder_state
    B, T = input_ids.shape
    Te = encoder_output.shape[1]
    mask = (input_ids != padding_idx).at[:, 0].set(True)
    hidden = jnp.take(params["embed"], input_ids, axis=0).astype(jnp.float32)
    pos_bias = compute_position_bias(params["rel_bias"], T, T)     # (H, T, T)

    causal = jnp.tril(jnp.ones((T, T), bool))
    self_add = jnp.where(causal[None] & mask[:, None, :], 0.0, NEG_INF)
    self_bias = pos_bias[None] + self_add[:, None]                 # (B, H, T, T)
    cross_add = jnp.where(encoder_mask.astype(bool), 0.0, NEG_INF)
    cross_bias = jnp.broadcast_to(cross_add[:, None, None, :], (B, N_HEADS, T, Te))

    def rmsnorm(x, w):
        return x * lax.rsqrt(jnp.mean(x * x, -1, keepdims=True) + EPS) * w

    def split(x):
        return x.reshape(x.shape[0], x.shape[1], N_HEADS, D_KV).transpose(0, 2, 1, 3)

    def merge(x):
        return x.transpose(0, 2, 1, 3).reshape(x.shape[0], x.shape[2], D_INNER)

    def attn(q, k, v, bias):
        s = jnp.einsum('bhqd,bhkd->bhqk', q, k) + bias
        return jnp.einsum('bhqk,bhkd->bhqd', jax.nn.softmax(s, axis=-1), v)

    x = hidden
    enc = encoder_output.astype(jnp.float32)
    for ly in params["layers"]:
        n = rmsnorm(x, ly["ln_self"])
        a = attn(split(n @ ly["q"]), split(n @ ly["k"]), split(n @ ly["v"]), self_bias)
        x = x + merge(a) @ ly["o"]
        n = rmsnorm(x, ly["ln_cross"])
        a = attn(split(n @ ly["cq"]), split(enc @ ly["ck"]), split(enc @ ly["cv"]),
                 cross_bias)
        x = x + merge(a) @ ly["co"]
        n = rmsnorm(x, ly["ln_ff"])
        h0, h1 = n @ ly["wi0"], n @ ly["wi1"]
        c = math.sqrt(2.0 / math.pi)
        g = 0.5 * h0 * (1.0 + jnp.tanh(c * (h0 + 0.044715 * h0 ** 3)))
        x = x + (g * h1) @ ly["wo"]
    return rmsnorm(x, params["final_ln"])


if __name__ == "__main__":
    key = jax.random.PRNGKey(0)
    pkey, ikey, ekey = jax.random.split(key, 3)
    params = init_params(pkey)

    B, T, Te = 2, 8, 8
    input_ids = jax.random.randint(ikey, (B, T), 0, VOCAB)   # LongTensor[batch, seqlen]
    encoder_output = jax.random.normal(ekey, (B, Te, D_MODEL), jnp.float32)
    encoder_mask = jnp.ones((B, Te), jnp.int32).at[1, Te - 2:].set(0)

    out, new_incr = parlai_mt5_decoder_forward(
        params, input_ids, (encoder_output, encoder_mask), incr_state=None)
    out = jax.block_until_ready(out)

    assert out.shape == (B, T, D_MODEL)
    assert out.dtype == jnp.float32
    assert bool(jnp.all(jnp.isfinite(out)))

    ref = reference_forward(params, input_ids, (encoder_output, encoder_mask))
    assert bool(jnp.allclose(out, ref, rtol=1e-2, atol=1e-2)), (
        "max abs err vs reference: %g" % float(jnp.max(jnp.abs(out - ref))))

    print("KERNEL_OK")
</pallas_src>

<mosaic_0001>
module attributes {stable_mosaic.version = 11 : i64} {
  func.func @_decoder_kernel(%arg0: i32, %arg1: memref<16x32xf32, #tpu.memory_space<vmem>>, %arg2: memref<16x32xf32, #tpu.memory_space<vmem>>, %arg3: memref<4x8x8xf32, #tpu.memory_space<vmem>>, %arg4: memref<2x8xf32, #tpu.memory_space<vmem>>, %arg5: memref<2x8xf32, #tpu.memory_space<vmem>>, %arg6: memref<1x32xf32, #tpu.memory_space<vmem>>, %arg7: memref<1x32x96xf32, #tpu.memory_space<vmem>>, %arg8: memref<1x32x32xf32, #tpu.memory_space<vmem>>, %arg9: memref<1x32x32xf32, #tpu.memory_space<vmem>>, %arg10: memref<1x32x64xf32, #tpu.memory_space<vmem>>, %arg11: memref<1x32x32xf32, #tpu.memory_space<vmem>>, %arg12: memref<1x32x128xf32, #tpu.memory_space<vmem>>, %arg13: memref<1x64x32xf32, #tpu.memory_space<vmem>>, %arg14: memref<16x32xf32, #tpu.memory_space<vmem>>, %arg15: memref<16x32xf32, #tpu.memory_space<vmem>>, %arg16: memref<8x8x8xf32, #tpu.memory_space<vmem>>, %arg17: memref<8x8x8xf32, #tpu.memory_space<vmem>>) attributes {dimension_semantics = [#tpu.dimension_semantics<arbitrary>], iteration_bounds = array<i64: 2>, scalar_prefetch = 0 : i64, scratch_operands = 3 : i64, tpu.core_type = #tpu.core_type<tc>, window_params = [{pipeline_mode = #tpu.pipeline_mode<synchronous>, transform_indices = @transform_0, window_bounds = array<i64: 16, 32>}, {pipeline_mode = #tpu.pipeline_mode<synchronous>, transform_indices = @transform_1, window_bounds = array<i64: 16, 32>}, {pipeline_mode = #tpu.pipeline_mode<synchronous>, transform_indices = @transform_2, window_bounds = array<i64: 4, 8, 8>}, {pipeline_mode = #tpu.pipeline_mode<synchronous>, transform_indices = @transform_3, window_bounds = array<i64: 2, 8>}, {pipeline_mode = #tpu.pipeline_mode<synchronous>, transform_indices = @transform_4, window_bounds = array<i64: 2, 8>}, {pipeline_mode = #tpu.pipeline_mode<synchronous>, transform_indices = @transform_5, window_bounds = array<i64: 1, 32>}, {transform_indices = @transform_6, window_bounds = array<i64: 1, 32, 96>}, {transform_indices = @transform_7, window_bounds = array<i64: 1, 32, 32>}, {transform_indices = @transform_8, window_bounds = array<i64: 1, 32, 32>}, {transform_indices = @transform_9, window_bounds = array<i64: 1, 32, 64>}, {transform_indices = @transform_10, window_bounds = array<i64: 1, 32, 32>}, {transform_indices = @transform_11, window_bounds = array<i64: 1, 32, 128>}, {transform_indices = @transform_12, window_bounds = array<i64: 1, 64, 32>}, {pipeline_mode = #tpu.pipeline_mode<synchronous>, transform_indices = @transform_13, window_bounds = array<i64: 16, 32>}]} {
    %c0_i32 = arith.constant 0 : i32
    %0 = arith.cmpi eq, %arg0, %c0_i32 : i32
    %1 = arith.extui %0 : i1 to i32
    %c0_i32_0 = arith.constant 0 : i32
    %2 = arith.cmpi ne, %1, %c0_i32_0 : i32
    scf.if %2 {
      %c0_61 = arith.constant 0 : index
      %c0_62 = arith.constant 0 : index
      %184 = vector.load %arg1[%c0_61, %c0_62] : memref<16x32xf32, #tpu.memory_space<vmem>>, vector<16x32xf32>
      %c0_63 = arith.constant 0 : index
      %c0_64 = arith.constant 0 : index
      %185 = vector.load %arg15[%c0_63, %c0_64] : memref<16x32xf32, #tpu.memory_space<vmem>>, vector<16x32xf32>
      tpu.vector_store %arg15[%c0_63, %c0_64], %184 {strides = array<i32>} : memref<16x32xf32, #tpu.memory_space<vmem>>, vector<16x32xf32>,
      %186 = tpu.iota {dimensions = array<i32: 0>} : vector<8x8xi32>
      %187 = tpu.iota {dimensions = array<i32: 1>} : vector<8x8xi32>
      %188 = arith.cmpi sle, %187, %186 : vector<8x8xi32>
      %c0_65 = arith.constant 0 : index
      %c0_66 = arith.constant 0 : index
      %189 = vector.load %arg4[%c0_65, %c0_66] : memref<2x8xf32, #tpu.memory_space<vmem>>, vector<2x8xf32>
      %cst_67 = arith.constant 5.000000e-01 : f32
      %190 = vector.broadcast %cst_67 : f32 to vector<2x8xf32>
      %191 = arith.cmpf ogt, %189, %190 : vector<2x8xf32>
      %192 = vector.shape_cast %188 : vector<8x8xi1> to vector<1x8x8xi1>
      %193 = vector.shape_cast %191 : vector<2x8xi1> to vector<2x1x8xi1>
      %194 = vector.broadcast %192 : vector<1x8x8xi1> to vector<2x8x8xi1>
      %195 = vector.broadcast %193 : vector<2x1x8xi1> to vector<2x8x8xi1>
      %196 = arith.andi %194, %195 : vector<2x8x8xi1>
      %cst_68 = arith.constant 0.000000e+00 : f32
      %cst_69 = arith.constant -1.000000e+09 : f32
      %197 = vector.broadcast %cst_68 : f32 to vector<2x8x8xf32>
      %198 = vector.broadcast %cst_69 : f32 to vector<2x8x8xf32>
      %199 = arith.select %196, %197, %198 : vector<2x8x8xi1>, vector<2x8x8xf32>
      %c0_70 = arith.constant 0 : index
      %c0_71 = arith.constant 0 : index
      %c0_72 = arith.constant 0 : index
      %200 = vector.load %arg3[%c0_70, %c0_71, %c0_72] : memref<4x8x8xf32, #tpu.memory_space<vmem>>, vector<4x8x8xf32>
      %201 = vector.shape_cast %200 : vector<4x8x8xf32> to vector<4x1x8x8xf32>
      %202 = vector.shape_cast %199 : vector<2x8x8xf32> to vector<1x2x8x8xf32>
      %203 = vector.broadcast %201 : vector<4x1x8x8xf32> to vector<4x2x8x8xf32>
      %204 = vector.broadcast %202 : vector<1x2x8x8xf32> to vector<4x2x8x8xf32>
      %205 = arith.addf %203, %204 : vector<4x2x8x8xf32>
      %206 = vector.shape_cast %205 : vector<4x2x8x8xf32> to vector<8x8x8xf32>
      %c0_73 = arith.constant 0 : index
      %c0_74 = arith.constant 0 : index
      %c0_75 = arith.constant 0 : index
      %207 = vector.load %arg16[%c0_73, %c0_74, %c0_75] : memref<8x8x8xf32, #tpu.memory_space<vmem>>, vector<8x8x8xf32>
      tpu.vector_store %arg16[%c0_73, %c0_74, %c0_75], %206 {strides = array<i32>} : memref<8x8x8xf32, #tpu.memory_space<vmem>>, vector<8x8x8xf32>,
      %c0_76 = arith.constant 0 : index
      %c0_77 = arith.constant 0 : index
      %208 = vector.load %arg5[%c0_76, %c0_77] : memref<2x8xf32, #tpu.memory_space<vmem>>, vector<2x8xf32>
      %cst_78 = arith.constant 5.000000e-01 : f32
      %209 = vector.broadcast %cst_78 : f32 to vector<2x8xf32>
      %210 = arith.cmpf ogt, %208, %209 : vector<2x8xf32>
      %cst_79 = arith.constant 0.000000e+00 : f32
      %cst_80 = arith.constant -1.000000e+09 : f32
      %211 = vector.broadcast %cst_79 : f32 to vector<2x8xf32>
      %212 = vector.broadcast %cst_80 : f32 to vector<2x8xf32>
      %213 = arith.select %210, %211, %212 : vector<2x8xi1>, vector<2x8xf32>
      %214 = vector.shape_cast %213 : vector<2x8xf32> to vector<1x2x1x8xf32>
      %215 = vector.shape_cast %214 : vector<1x2x1x8xf32> to vector<1x2x1x8xf32>
      %216 = vector.broadcast %215 : vector<1x2x1x8xf32> to vector<4x2x8x8xf32>
      %217 = vector.shape_cast %216 : vector<4x2x8x8xf32> to vector<8x8x8xf32>
      %c0_81 = arith.constant 0 : index
      %c0_82 = arith.constant 0 : index
      %c0_83 = arith.constant 0 : index
      %218 = vector.load %arg17[%c0_81, %c0_82, %c0_83] : memref<8x8x8xf32, #tpu.memory_space<vmem>>, vector<8x8x8xf32>
      tpu.vector_store %arg17[%c0_81, %c0_82, %c0_83], %217 {strides = array<i32>} : memref<8x8x8xf32, #tpu.memory_space<vmem>>, vector<8x8x8xf32>,
    } else {
    }
    %c0 = arith.constant 0 : index
    %c0_1 = arith.constant 0 : index
    %3 = vector.load %arg15[%c0, %c0_1] : memref<16x32xf32, #tpu.memory_space<vmem>>, vector<16x32xf32>
    %4 = arith.mulf %3, %3 : vector<16x32xf32>
    %cst = arith.constant dense<0.000000e+00> : vector<16xf32>
    %5 = vector.multi_reduction <add>, %4, %cst [1] : vector<16x32xf32> to vector<16xf32>
    %6 = vector.shape_cast %5 : vector<16xf32> to vector<16x1xf32>
    %cst_2 = arith.constant 3.200000e+01 : f32
    %7 = vector.broadcast %cst_2 : f32 to vector<16x1xf32>
    %8 = arith.divf %6, %7 : vector<16x1xf32>
    %cst_3 = arith.constant 9.99999997E-7 : f32
    %9 = vector.broadcast %cst_3 : f32 to vector<16x1xf32>
    %10 = arith.addf %8, %9 : vector<16x1xf32>
    %11 = math.rsqrt %10 : vector<16x1xf32>
    %12 = vector.broadcast %11 : vector<16x1xf32> to vector<16x32xf32>
    %13 = arith.mulf %3, %12 : vector<16x32xf32>
    %c0_4 = arith.constant 0 : index
    %c0_5 = arith.constant 0 : index
    %c0_6 = arith.constant 0 : index
    %14 = vector.load %arg7[%c0_4, %c0_5, %c0_6] : memref<1x32x96xf32, #tpu.memory_space<vmem>>, vector<1x32x96xf32>
    %15 = vector.shape_cast %14 : vector<1x32x96xf32> to vector<32x96xf32>
    %cst_7 = arith.constant dense<0.000000e+00> : vector<16x96xf32>
    %16 = tpu.matmul %13, %15, %cst_7 {dimension_numbers = #tpu.dot_dimension_numbers<[1], [0], [0], [1], [0, 0, 1, 1], [], []>} : vector<16x32xf32>, vector<32x96xf32>, vector<16x96xf32> -> vector<16x96xf32>
    %17 = vector.extract_strided_slice %16 {offsets = [0, 0], sizes = [16, 32], strides = [1, 1]} : vector<16x96xf32> to vector<16x32xf32>
    %18 = vector.extract_strided_slice %17 {offsets = [0, 0], sizes = [16, 8], strides = [1, 1]} : vector<16x32xf32> to vector<16x8xf32>
    %19 = vector.shape_cast %18 : vector<16x8xf32> to vector<2x8x8xf32>
    %20 = vector.extract_strided_slice %17 {offsets = [0, 8], sizes = [16, 8], strides = [1, 1]} : vector<16x32xf32> to vector<16x8xf32>
    %21 = vector.shape_cast %20 : vector<16x8xf32> to vector<2x8x8xf32>
    %22 = vector.extract_strided_slice %17 {offsets = [0, 16], sizes = [16, 8], strides = [1, 1]} : vector<16x32xf32> to vector<16x8xf32>
    %23 = vector.shape_cast %22 : vector<16x8xf32> to vector<2x8x8xf32>
    %24 = vector.extract_strided_slice %17 {offsets = [0, 24], sizes = [16, 8], strides = [1, 1]} : vector<16x32xf32> to vector<16x8xf32>
    %25 = vector.shape_cast %24 : vector<16x8xf32> to vector<2x8x8xf32>
    %26 = tpu.concatenate %19, %21, %23, %25 in 0 : vector<2x8x8xf32>, vector<2x8x8xf32>, vector<2x8x8xf32>, vector<2x8x8xf32> -> vector<8x8x8xf32>
    %27 = vector.extract_strided_slice %16 {offsets = [0, 32], sizes = [16, 32], strides = [1, 1]} : vector<16x96xf32> to vector<16x32xf32>
    %28 = vector.extract_strided_slice %27 {offsets = [0, 0], sizes = [16, 8], strides = [1, 1]} : vector<16x32xf32> to vector<16x8xf32>
    %29 = vector.shape_cast %28 : vector<16x8xf32> to vector<2x8x8xf32>
    %30 = vector.extract_strided_slice %27 {offsets = [0, 8], sizes = [16, 8], strides = [1, 1]} : vector<16x32xf32> to vector<16x8xf32>
    %31 = vector.shape_cast %30 : vector<16x8xf32> to vector<2x8x8xf32>
    %32 = vector.extract_strided_slice %27 {offsets = [0, 16], sizes = [16, 8], strides = [1, 1]} : vector<16x32xf32> to vector<16x8xf32>
    %33 = vector.shape_cast %32 : vector<16x8xf32> to vector<2x8x8xf32>
    %34 = vector.extract_strided_slice %27 {offsets = [0, 24], sizes = [16, 8], strides = [1, 1]} : vector<16x32xf32> to vector<16x8xf32>
    %35 = vector.shape_cast %34 : vector<16x8xf32> to vector<2x8x8xf32>
    %36 = tpu.concatenate %29, %31, %33, %35 in 0 : vector<2x8x8xf32>, vector<2x8x8xf32>, vector<2x8x8xf32>, vector<2x8x8xf32> -> vector<8x8x8xf32>
    %37 = vector.extract_strided_slice %16 {offsets = [0, 64], sizes = [16, 32], strides = [1, 1]} : vector<16x96xf32> to vector<16x32xf32>
    %38 = vector.extract_strided_slice %37 {offsets = [0, 0], sizes = [16, 8], strides = [1, 1]} : vector<16x32xf32> to vector<16x8xf32>
    %39 = vector.shape_cast %38 : vector<16x8xf32> to vector<2x8x8xf32>
    %40 = vector.extract_strided_slice %37 {offsets = [0, 8], sizes = [16, 8], strides = [1, 1]} : vector<16x32xf32> to vector<16x8xf32>
    %41 = vector.shape_cast %40 : vector<16x8xf32> to vector<2x8x8xf32>
    %42 = vector.extract_strided_slice %37 {offsets = [0, 16], sizes = [16, 8], strides = [1, 1]} : vector<16x32xf32> to vector<16x8xf32>
    %43 = vector.shape_cast %42 : vector<16x8xf32> to vector<2x8x8xf32>
    %44 = vector.extract_strided_slice %37 {offsets = [0, 24], sizes = [16, 8], strides = [1, 1]} : vector<16x32xf32> to vector<16x8xf32>
    %45 = vector.shape_cast %44 : vector<16x8xf32> to vector<2x8x8xf32>
    %46 = tpu.concatenate %39, %41, %43, %45 in 0 : vector<2x8x8xf32>, vector<2x8x8xf32>, vector<2x8x8xf32>, vector<2x8x8xf32> -> vector<8x8x8xf32>
    %c0_8 = arith.constant 0 : index
    %c0_9 = arith.constant 0 : index
    %c0_10 = arith.constant 0 : index
    %47 = vector.load %arg16[%c0_8, %c0_9, %c0_10] : memref<8x8x8xf32, #tpu.memory_space<vmem>>, vector<8x8x8xf32>
    "tpu.trace_start"() <{level = 10 : i32, message = "bqd,bkd->bqk"}> : () -> ()
    %cst_11 = arith.constant dense<0.000000e+00> : vector<8x8x8xf32>
    %48 = tpu.matmul %26, %36, %cst_11 {dimension_numbers = #tpu.dot_dimension_numbers<[2], [2], [1], [1], [0, 0, 0, 1, 1, 1], [0], [0]>} : vector<8x8x8xf32>, vector<8x8x8xf32>, vector<8x8x8xf32> -> vector<8x8x8xf32>
    "tpu.trace_stop"() : () -> ()
    %49 = arith.addf %48, %47 : vector<8x8x8xf32>
    %cst_12 = arith.constant dense<0xFF800000> : vector<8x8xf32>
    %50 = vector.multi_reduction <maximumf>, %49, %cst_12 [2] : vector<8x8x8xf32> to vector<8x8xf32>
    %51 = vector.shape_cast %50 : vector<8x8xf32> to vector<8x8x1xf32>
    %52 = vector.broadcast %51 : vector<8x8x1xf32> to vector<8x8x8xf32>
    %53 = arith.subf %49, %52 : vector<8x8x8xf32>
    %54 = math.exp %53 : vector<8x8x8xf32>
    %cst_13 = arith.constant dense<0.000000e+00> : vector<8x8xf32>
    %55 = vector.multi_reduction <add>, %54, %cst_13 [2] : vector<8x8x8xf32> to vector<8x8xf32>
    %56 = vector.shape_cast %55 : vector<8x8xf32> to vector<8x8x1xf32>
    %57 = tpu.reciprocal %56 {approx = true} : vector<8x8x1xf32> -> vector<8x8x1xf32>
    %58 = vector.broadcast %57 : vector<8x8x1xf32> to vector<8x8x8xf32>
    %59 = arith.mulf %54, %58 : vector<8x8x8xf32>
    "tpu.trace_start"() <{level = 10 : i32, message = "bqk,bkd->bqd"}> : () -> ()
    %cst_14 = arith.constant dense<0.000000e+00> : vector<8x8x8xf32>
    %60 = tpu.matmul %59, %46, %cst_14 {dimension_numbers = #tpu.dot_dimension_numbers<[2], [1], [1], [2], [0, 0, 0, 1, 1, 2], [0], [0]>} : vector<8x8x8xf32>, vector<8x8x8xf32>, vector<8x8x8xf32> -> vector<8x8x8xf32>
    "tpu.trace_stop"() : () -> ()
    %61 = vector.extract_strided_slice %60 {offsets = [0, 0, 0], sizes = [2, 8, 8], strides = [1, 1, 1]} : vector<8x8x8xf32> to vector<2x8x8xf32>
    %62 = vector.shape_cast %61 : vector<2x8x8xf32> to vector<16x8xf32>
    %63 = vector.extract_strided_slice %60 {offsets = [2, 0, 0], sizes = [2, 8, 8], strides = [1, 1, 1]} : vector<8x8x8xf32> to vector<2x8x8xf32>
    %64 = vector.shape_cast %63 : vector<2x8x8xf32> to vector<16x8xf32>
    %65 = vector.extract_strided_slice %60 {offsets = [4, 0, 0], sizes = [2, 8, 8], strides = [1, 1, 1]} : vector<8x8x8xf32> to vector<2x8x8xf32>
    %66 = vector.shape_cast %65 : vector<2x8x8xf32> to vector<16x8xf32>
    %67 = vector.extract_strided_slice %60 {offsets = [6, 0, 0], sizes = [2, 8, 8], strides = [1, 1, 1]} : vector<8x8x8xf32> to vector<2x8x8xf32>
    %68 = vector.shape_cast %67 : vector<2x8x8xf32> to vector<16x8xf32>
    %69 = tpu.concatenate %62, %64, %66, %68 in 1 : vector<16x8xf32>, vector<16x8xf32>, vector<16x8xf32>, vector<16x8xf32> -> vector<16x32xf32>
    %c0_15 = arith.constant 0 : index
    %c0_16 = arith.constant 0 : index
    %c0_17 = arith.constant 0 : index
    %70 = vector.load %arg8[%c0_15, %c0_16, %c0_17] : memref<1x32x32xf32, #tpu.memory_space<vmem>>, vector<1x32x32xf32>
    %71 = vector.shape_cast %70 : vector<1x32x32xf32> to vector<32x32xf32>
    %cst_18 = arith.constant dense<0.000000e+00> : vector<16x32xf32>
    %72 = tpu.matmul %69, %71, %cst_18 {dimension_numbers = #tpu.dot_dimension_numbers<[1], [0], [0], [1], [0, 0, 1, 1], [], []>} : vector<16x32xf32>, vector<32x32xf32>, vector<16x32xf32> -> vector<16x32xf32>
    %73 = arith.addf %3, %72 : vector<16x32xf32>
    %74 = arith.mulf %73, %73 : vector<16x32xf32>
    %cst_19 = arith.constant dense<0.000000e+00> : vector<16xf32>
    %75 = vector.multi_reduction <add>, %74, %cst_19 [1] : vector<16x32xf32> to vector<16xf32>
    %76 = vector.shape_cast %75 : vector<16xf32> to vector<16x1xf32>
    %cst_20 = arith.constant 3.200000e+01 : f32
    %77 = vector.broadcast %cst_20 : f32 to vector<16x1xf32>
    %78 = arith.divf %76, %77 : vector<16x1xf32>
    %cst_21 = arith.constant 9.99999997E-7 : f32
    %79 = vector.broadcast %cst_21 : f32 to vector<16x1xf32>
    %80 = arith.addf %78, %79 : vector<16x1xf32>
    %81 = math.rsqrt %80 : vector<16x1xf32>
    %82 = vector.broadcast %81 : vector<16x1xf32> to vector<16x32xf32>
    %83 = arith.mulf %73, %82 : vector<16x32xf32>
    %c0_22 = arith.constant 0 : index
    %c0_23 = arith.constant 0 : index
    %c0_24 = arith.constant 0 : index
    %84 = vector.load %arg9[%c0_22, %c0_23, %c0_24] : memref<1x32x32xf32, #tpu.memory_space<vmem>>, vector<1x32x32xf32>
    %85 = vector.shape_cast %84 : vector<1x32x32xf32> to vector<32x32xf32>
    %cst_25 = arith.constant dense<0.000000e+00> : vector<16x32xf32>
    %86 = tpu.matmul %83, %85, %cst_25 {dimension_numbers = #tpu.dot_dimension_numbers<[1], [0], [0], [1], [0, 0, 1, 1], [], []>} : vector<16x32xf32>, vector<32x32xf32>, vector<16x32xf32> -> vector<16x32xf32>
    %87 = vector.extract_strided_slice %86 {offsets = [0, 0], sizes = [16, 8], strides = [1, 1]} : vector<16x32xf32> to vector<16x8xf32>
    %88 = vector.shape_cast %87 : vector<16x8xf32> to vector<2x8x8xf32>
    %89 = vector.extract_strided_slice %86 {offsets = [0, 8], sizes = [16, 8], strides = [1, 1]} : vector<16x32xf32> to vector<16x8xf32>
    %90 = vector.shape_cast %89 : vector<16x8xf32> to vector<2x8x8xf32>
    %91 = vector.extract_strided_slice %86 {offsets = [0, 16], sizes = [16, 8], strides = [1, 1]} : vector<16x32xf32> to vector<16x8xf32>
    %92 = vector.shape_cast %91 : vector<16x8xf32> to vector<2x8x8xf32>
    %93 = vector.extract_strided_slice %86 {offsets = [0, 24], sizes = [16, 8], strides = [1, 1]} : vector<16x32xf32> to vector<16x8xf32>
    %94 = vector.shape_cast %93 : vector<16x8xf32> to vector<2x8x8xf32>
    %95 = tpu.concatenate %88, %90, %92, %94 in 0 : vector<2x8x8xf32>, vector<2x8x8xf32>, vector<2x8x8xf32>, vector<2x8x8xf32> -> vector<8x8x8xf32>
    %c0_26 = arith.constant 0 : index
    %c0_27 = arith.constant 0 : index
    %96 = vector.load %arg2[%c0_26, %c0_27] : memref<16x32xf32, #tpu.memory_space<vmem>>, vector<16x32xf32>
    %c0_28 = arith.constant 0 : index
    %c0_29 = arith.constant 0 : index
    %c0_30 = arith.constant 0 : index
    %97 = vector.load %arg10[%c0_28, %c0_29, %c0_30] : memref<1x32x64xf32, #tpu.memory_space<vmem>>, vector<1x32x64xf32>
    %98 = vector.shape_cast %97 : vector<1x32x64xf32> to vector<32x64xf32>
    %cst_31 = arith.constant dense<0.000000e+00> : vector<16x64xf32>
    %99 = tpu.matmul %96, %98, %cst_31 {dimension_numbers = #tpu.dot_dimension_numbers<[1], [0], [0], [1], [0, 0, 1, 1], [], []>} : vector<16x32xf32>, vector<32x64xf32>, vector<16x64xf32> -> vector<16x64xf32>
    %100 = vector.extract_strided_slice %99 {offsets = [0, 0], sizes = [16, 32], strides = [1, 1]} : vector<16x64xf32> to vector<16x32xf32>
    %101 = vector.extract_strided_slice %100 {offsets = [0, 0], sizes = [16, 8], strides = [1, 1]} : vector<16x32xf32> to vector<16x8xf32>
    %102 = vector.shape_cast %101 : vector<16x8xf32> to vector<2x8x8xf32>
    %103 = vector.extract_strided_slice %100 {offsets = [0, 8], sizes = [16, 8], strides = [1, 1]} : vector<16x32xf32> to vector<16x8xf32>
    %104 = vector.shape_cast %103 : vector<16x8xf32> to vector<2x8x8xf32>
    %105 = vector.extract_strided_slice %100 {offsets = [0, 16], sizes = [16, 8], strides = [1, 1]} : vector<16x32xf32> to vector<16x8xf32>
    %106 = vector.shape_cast %105 : vector<16x8xf32> to vector<2x8x8xf32>
    %107 = vector.extract_strided_slice %100 {offsets = [0, 24], sizes = [16, 8], strides = [1, 1]} : vector<16x32xf32> to vector<16x8xf32>
    %108 = vector.shape_cast %107 : vector<16x8xf32> to vector<2x8x8xf32>
    %109 = tpu.concatenate %102, %104, %106, %108 in 0 : vector<2x8x8xf32>, vector<2x8x8xf32>, vector<2x8x8xf32>, vector<2x8x8xf32> -> vector<8x8x8xf32>
    %110 = vector.extract_strided_slice %99 {offsets = [0, 32], sizes = [16, 32], strides = [1, 1]} : vector<16x64xf32> to vector<16x32xf32>
    %111 = vector.extract_strided_slice %110 {offsets = [0, 0], sizes = [16, 8], strides = [1, 1]} : vector<16x32xf32> to vector<16x8xf32>
    %112 = vector.shape_cast %111 : vector<16x8xf32> to vector<2x8x8xf32>
    %113 = vector.extract_strided_slice %110 {offsets = [0, 8], sizes = [16, 8], strides = [1, 1]} : vector<16x32xf32> to vector<16x8xf32>
    %114 = vector.shape_cast %113 : vector<16x8xf32> to vector<2x8x8xf32>
    %115 = vector.extract_strided_slice %110 {offsets = [0, 16], sizes = [16, 8], strides = [1, 1]} : vector<16x32xf32> to vector<16x8xf32>
    %116 = vector.shape_cast %115 : vector<16x8xf32> to vector<2x8x8xf32>
    %117 = vector.extract_strided_slice %110 {offsets = [0, 24], sizes = [16, 8], strides = [1, 1]} : vector<16x32xf32> to vector<16x8xf32>
    %118 = vector.shape_cast %117 : vector<16x8xf32> to vector<2x8x8xf32>
    %119 = tpu.concatenate %112, %114, %116, %118 in 0 : vector<2x8x8xf32>, vector<2x8x8xf32>, vector<2x8x8xf32>, vector<2x8x8xf32> -> vector<8x8x8xf32>
    %c0_32 = arith.constant 0 : index
    %c0_33 = arith.constant 0 : index
    %c0_34 = arith.constant 0 : index
    %120 = vector.load %arg17[%c0_32, %c0_33, %c0_34] : memref<8x8x8xf32, #tpu.memory_space<vmem>>, vector<8x8x8xf32>
    "tpu.trace_start"() <{level = 10 : i32, message = "bqd,bkd->bqk"}> : () -> ()
    %cst_35 = arith.constant dense<0.000000e+00> : vector<8x8x8xf32>
    %121 = tpu.matmul %95, %109, %cst_35 {dimension_numbers = #tpu.dot_dimension_numbers<[2], [2], [1], [1], [0, 0, 0, 1, 1, 1], [0], [0]>} : vector<8x8x8xf32>, vector<8x8x8xf32>, vector<8x8x8xf32> -> vector<8x8x8xf32>
    "tpu.trace_stop"() : () -> ()
    %122 = arith.addf %121, %120 : vector<8x8x8xf32>
    %cst_36 = arith.constant dense<0xFF800000> : vector<8x8xf32>
    %123 = vector.multi_reduction <maximumf>, %122, %cst_36 [2] : vector<8x8x8xf32> to vector<8x8xf32>
    %124 = vector.shape_cast %123 : vector<8x8xf32> to vector<8x8x1xf32>
    %125 = vector.broadcast %124 : vector<8x8x1xf32> to vector<8x8x8xf32>
    %126 = arith.subf %122, %125 : vector<8x8x8xf32>
    %127 = math.exp %126 : vector<8x8x8xf32>
    %cst_37 = arith.constant dense<0.000000e+00> : vector<8x8xf32>
    %128 = vector.multi_reduction <add>, %127, %cst_37 [2] : vector<8x8x8xf32> to vector<8x8xf32>
    %129 = vector.shape_cast %128 : vector<8x8xf32> to vector<8x8x1xf32>
    %130 = tpu.reciprocal %129 {approx = true} : vector<8x8x1xf32> -> vector<8x8x1xf32>
    %131 = vector.broadcast %130 : vector<8x8x1xf32> to vector<8x8x8xf32>
    %132 = arith.mulf %127, %131 : vector<8x8x8xf32>
    "tpu.trace_start"() <{level = 10 : i32, message = "bqk,bkd->bqd"}> : () -> ()
    %cst_38 = arith.constant dense<0.000000e+00> : vector<8x8x8xf32>
    %133 = tpu.matmul %132, %119, %cst_38 {dimension_numbers = #tpu.dot_dimension_numbers<[2], [1], [1], [2], [0, 0, 0, 1, 1, 2], [0], [0]>} : vector<8x8x8xf32>, vector<8x8x8xf32>, vector<8x8x8xf32> -> vector<8x8x8xf32>
    "tpu.trace_stop"() : () -> ()
    %134 = vector.extract_strided_slice %133 {offsets = [0, 0, 0], sizes = [2, 8, 8], strides = [1, 1, 1]} : vector<8x8x8xf32> to vector<2x8x8xf32>
    %135 = vector.shape_cast %134 : vector<2x8x8xf32> to vector<16x8xf32>
    %136 = vector.extract_strided_slice %133 {offsets = [2, 0, 0], sizes = [2, 8, 8], strides = [1, 1, 1]} : vector<8x8x8xf32> to vector<2x8x8xf32>
    %137 = vector.shape_cast %136 : vector<2x8x8xf32> to vector<16x8xf32>
    %138 = vector.extract_strided_slice %133 {offsets = [4, 0, 0], sizes = [2, 8, 8], strides = [1, 1, 1]} : vector<8x8x8xf32> to vector<2x8x8xf32>
    %139 = vector.shape_cast %138 : vector<2x8x8xf32> to vector<16x8xf32>
    %140 = vector.extract_strided_slice %133 {offsets = [6, 0, 0], sizes = [2, 8, 8], strides = [1, 1, 1]} : vector<8x8x8xf32> to vector<2x8x8xf32>
    %141 = vector.shape_cast %140 : vector<2x8x8xf32> to vector<16x8xf32>
    %142 = tpu.concatenate %135, %137, %139, %141 in 1 : vector<16x8xf32>, vector<16x8xf32>, vector<16x8xf32>, vector<16x8xf32> -> vector<16x32xf32>
    %c0_39 = arith.constant 0 : index
    %c0_40 = arith.constant 0 : index
    %c0_41 = arith.constant 0 : index
    %143 = vector.load %arg11[%c0_39, %c0_40, %c0_41] : memref<1x32x32xf32, #tpu.memory_space<vmem>>, vector<1x32x32xf32>
    %144 = vector.shape_cast %143 : vector<1x32x32xf32> to vector<32x32xf32>
    %cst_42 = arith.constant dense<0.000000e+00> : vector<16x32xf32>
    %145 = tpu.matmul %142, %144, %cst_42 {dimension_numbers = #tpu.dot_dimension_numbers<[1], [0], [0], [1], [0, 0, 1, 1], [], []>} : vector<16x32xf32>, vector<32x32xf32>, vector<16x32xf32> -> vector<16x32xf32>
    %146 = arith.addf %73, %145 : vector<16x32xf32>
    %147 = arith.mulf %146, %146 : vector<16x32xf32>
    %cst_43 = arith.constant dense<0.000000e+00> : vector<16xf32>
    %148 = vector.multi_reduction <add>, %147, %cst_43 [1] : vector<16x32xf32> to vector<16xf32>
    %149 = vector.shape_cast %148 : vector<16xf32> to vector<16x1xf32>
    %cst_44 = arith.constant 3.200000e+01 : f32
    %150 = vector.broadcast %cst_44 : f32 to vector<16x1xf32>
    %151 = arith.divf %149, %150 : vector<16x1xf32>
    %cst_45 = arith.constant 9.99999997E-7 : f32
    %152 = vector.broadcast %cst_45 : f32 to vector<16x1xf32>
    %153 = arith.addf %151, %152 : vector<16x1xf32>
    %154 = math.rsqrt %153 : vector<16x1xf32>
    %155 = vector.broadcast %154 : vector<16x1xf32> to vector<16x32xf32>
    %156 = arith.mulf %146, %155 : vector<16x32xf32>
    %c0_46 = arith.constant 0 : index
    %c0_47 = arith.constant 0 : index
    %c0_48 = arith.constant 0 : index
    %157 = vector.load %arg12[%c0_46, %c0_47, %c0_48] : memref<1x32x128xf32, #tpu.memory_space<vmem>>, vector<1x32x128xf32>
    %158 = vector.shape_cast %157 : vector<1x32x128xf32> to vector<32x128xf32>
    %cst_49 = arith.constant dense<0.000000e+00> : vector<16x128xf32>
    %159 = tpu.matmul %156, %158, %cst_49 {dimension_numbers = #tpu.dot_dimension_numbers<[1], [0], [0], [1], [0, 0, 1, 1], [], []>} : vector<16x32xf32>, vector<32x128xf32>, vector<16x128xf32> -> vector<16x128xf32>
    %160 = vector.extract_strided_slice %159 {offsets = [0, 0], sizes = [16, 64], strides = [1, 1]} : vector<16x128xf32> to vector<16x64xf32>
    %cst_50 = arith.constant 5.000000e-01 : f32
    %161 = vector.broadcast %cst_50 : f32 to vector<16x64xf32>
    %162 = arith.mulf %161, %160 : vector<16x64xf32>
    %cst_51 = arith.constant 4.471500e-02 : f32
    %163 = vector.broadcast %cst_51 : f32 to vector<16x64xf32>
    %164 = arith.mulf %163, %160 : vector<16x64xf32>
    %165 = arith.mulf %164, %160 : vector<16x64xf32>
    %166 = arith.mulf %165, %160 : vector<16x64xf32>
    %167 = arith.addf %160, %166 : vector<16x64xf32>
    %cst_52 = arith.constant 0.797884583 : f32
    %168 = vector.broadcast %cst_52 : f32 to vector<16x64xf32>
    %169 = arith.mulf %168, %167 : vector<16x64xf32>
    %170 = math.tanh %169 : vector<16x64xf32>
    %cst_53 = arith.constant 1.000000e+00 : f32
    %171 = vector.broadcast %cst_53 : f32 to vector<16x64xf32>
    %172 = arith.addf %171, %170 : vector<16x64xf32>
    %173 = arith.mulf %162, %172 : vector<16x64xf32>
    %174 = vector.extract_strided_slice %159 {offsets = [0, 64], sizes = [16, 64], strides = [1, 1]} : vector<16x128xf32> to vector<16x64xf32>
    %175 = arith.mulf %173, %174 : vector<16x64xf32>
    %c0_54 = arith.constant 0 : index
    %c0_55 = arith.constant 0 : index
    %c0_56 = arith.constant 0 : index
    %176 = vector.load %arg13[%c0_54, %c0_55, %c0_56] : memref<1x64x32xf32, #tpu.memory_space<vmem>>, vector<1x64x32xf32>
    %177 = vector.shape_cast %176 : vector<1x64x32xf32> to vector<64x32xf32>
    %cst_57 = arith.constant dense<0.000000e+00> : vector<16x32xf32>
    %178 = tpu.matmul %175, %177, %cst_57 {dimension_numbers = #tpu.dot_dimension_numbers<[1], [0], [0], [1], [0, 0, 1, 1], [], []>} : vector<16x64xf32>, vector<64x32xf32>, vector<16x32xf32> -> vector<16x32xf32>
    %179 = arith.addf %146, %178 : vector<16x32xf32>
    %c0_58 = arith.constant 0 : index
    %c0_59 = arith.constant 0 : index
    %180 = vector.load %arg15[%c0_58, %c0_59] : memref<16x32xf32, #tpu.memory_space<vmem>>, vector<16x32xf32>
    tpu.vector_store %arg15[%c0_58, %c0_59], %179 {strides = array<i32>} : memref<16x32xf32, #tpu.memory_space<vmem>>, vector<16x32xf32>,
    %c1_i32 = arith.constant 1 : i32
    %181 = arith.cmpi eq, %arg0, %c1_i32 : i32
    %182 = arith.extui %181 : i1 to i32
    %c0_i32_60 = arith.constant 0 : i32
    %183 = arith.cmpi ne, %182, %c0_i32_60 : i32
    scf.if %183 {
      %184 = arith.mulf %179, %179 : vector<16x32xf32>
      %cst_61 = arith.constant dense<0.000000e+00> : vector<16xf32>
      %185 = vector.multi_reduction <add>, %184, %cst_61 [1] : vector<16x32xf32> to vector<16xf32>
      %186 = vector.shape_cast %185 : vector<16xf32> to vector<16x1xf32>
      %cst_62 = arith.constant 3.200000e+01 : f32
      %187 = vector.broadcast %cst_62 : f32 to vector<16x1xf32>
      %188 = arith.divf %186, %187 : vector<16x1xf32>
      %cst_63 = arith.constant 9.99999997E-7 : f32
      %189 = vector.broadcast %cst_63 : f32 to vector<16x1xf32>
      %190 = arith.addf %188, %189 : vector<16x1xf32>
      %191 = math.rsqrt %190 : vector<16x1xf32>
      %192 = vector.broadcast %191 : vector<16x1xf32> to vector<16x32xf32>
      %193 = arith.mulf %179, %192 : vector<16x32xf32>
      %c0_64 = arith.constant 0 : index
      %c0_65 = arith.constant 0 : index
      %194 = vector.load %arg6[%c0_64, %c0_65] : memref<1x32xf32, #tpu.memory_space<vmem>>, vector<1x32xf32>
      %195 = vector.broadcast %194 : vector<1x32xf32> to vector<16x32xf32>
      %196 = arith.mulf %193, %195 : vector<16x32xf32>
      %c0_66 = arith.constant 0 : index
      %c0_67 = arith.constant 0 : index
      %197 = vector.load %arg14[%c0_66, %c0_67] : memref<16x32xf32, #tpu.memory_space<vmem>>, vector<16x32xf32>
      tpu.vector_store %arg14[%c0_66, %c0_67], %196 {strides = array<i32>} : memref<16x32xf32, #tpu.memory_space<vmem>>, vector<16x32xf32>,
    } else {
    }
    return
  }
  func.func @transform_0(%arg0: i32) -> (i32, i32) {
    %c0_i32 = arith.constant 0 : i32
    %c0_i32_0 = arith.constant 0 : i32
    %c0_i32_1 = arith.constant 0 : i32
    return %c0_i32, %c0_i32_0 : i32, i32
  }
  func.func @transform_1(%arg0: i32) -> (i32, i32) {
    %c0_i32 = arith.constant 0 : i32
    %c0_i32_0 = arith.constant 0 : i32
    %c0_i32_1 = arith.constant 0 : i32
    return %c0_i32, %c0_i32_0 : i32, i32
  }
  func.func @transform_2(%arg0: i32) -> (i32, i32, i32) {
    %c0_i32 = arith.constant 0 : i32
    %c0_i32_0 = arith.constant 0 : i32
    %c0_i32_1 = arith.constant 0 : i32
    %c0_i32_2 = arith.constant 0 : i32
    return %c0_i32, %c0_i32_0, %c0_i32_1 : i32, i32, i32
  }
  func.func @transform_3(%arg0: i32) -> (i32, i32) {
    %c0_i32 = arith.constant 0 : i32
    %c0_i32_0 = arith.constant 0 : i32
    %c0_i32_1 = arith.constant 0 : i32
    return %c0_i32, %c0_i32_0 : i32, i32
  }
  func.func @transform_4(%arg0: i32) -> (i32, i32) {
    %c0_i32 = arith.constant 0 : i32
    %c0_i32_0 = arith.constant 0 : i32
    %c0_i32_1 = arith.constant 0 : i32
    return %c0_i32, %c0_i32_0 : i32, i32
  }
  func.func @transform_5(%arg0: i32) -> (i32, i32) {
    %c0_i32 = arith.constant 0 : i32
    %c0_i32_0 = arith.constant 0 : i32
    %c0_i32_1 = arith.constant 0 : i32
    return %c0_i32, %c0_i32_0 : i32, i32
  }
  func.func @transform_6(%arg0: i32) -> (i32, i32, i32) {
    %c0_i32 = arith.constant 0 : i32
    %c0_i32_0 = arith.constant 0 : i32
    %c0_i32_1 = arith.constant 0 : i32
    return %arg0, %c0_i32, %c0_i32_0 : i32, i32, i32
  }
  func.func @transform_7(%arg0: i32) -> (i32, i32, i32) {
    %c0_i32 = arith.constant 0 : i32
    %c0_i32_0 = arith.constant 0 : i32
    %c0_i32_1 = arith.constant 0 : i32
    return %arg0, %c0_i32, %c0_i32_0 : i32, i32, i32
  }
  func.func @transform_8(%arg0: i32) -> (i32, i32, i32) {
    %c0_i32 = arith.constant 0 : i32
    %c0_i32_0 = arith.constant 0 : i32
    %c0_i32_1 = arith.constant 0 : i32
    return %arg0, %c0_i32, %c0_i32_0 : i32, i32, i32
  }
  func.func @transform_9(%arg0: i32) -> (i32, i32, i32) {
    %c0_i32 = arith.constant 0 : i32
    %c0_i32_0 = arith.constant 0 : i32
    %c0_i32_1 = arith.constant 0 : i32
    return %arg0, %c0_i32, %c0_i32_0 : i32, i32, i32
  }
  func.func @transform_10(%arg0: i32) -> (i32, i32, i32) {
    %c0_i32 = arith.constant 0 : i32
    %c0_i32_0 = arith.constant 0 : i32
    %c0_i32_1 = arith.constant 0 : i32
    return %arg0, %c0_i32, %c0_i32_0 : i32, i32, i32
  }
  func.func @transform_11(%arg0: i32) -> (i32, i32, i32) {
    %c0_i32 = arith.constant 0 : i32
    %c0_i32_0 = arith.constant 0 : i32
    %c0_i32_1 = arith.constant 0 : i32
    return %arg0, %c0_i32, %c0_i32_0 : i32, i32, i32
  }
  func.func @transform_12(%arg0: i32) -> (i32, i32, i32) {
    %c0_i32 = arith.constant 0 : i32
    %c0_i32_0 = arith.constant 0 : i32
    %c0_i32_1 = arith.constant 0 : i32
    return %arg0, %c0_i32, %c0_i32_0 : i32, i32, i32
  }
  func.func @transform_13(%arg0: i32) -> (i32, i32) {
    %c0_i32 = arith.constant 0 : i32
    %c0_i32_0 = arith.constant 0 : i32
    %c0_i32_1 = arith.constant 0 : i32
    return %c0_i32, %c0_i32_0 : i32, i32
  }
}

</mosaic_0001>

<bundles_post_ra>
// kernel: tpu_custom_call.1
= control target key start
LH: loop header
LB: loop body
LE: loop exit
PB: predicated region body
PF: predicated region fallthrough
CT: control target
= control target key end

     0   :  { %s6140_s0 = inlined_call_operand.hbm [shape: f32[16,32], index: 0, kind: input, shape index: {}]   ;;  %s6141_s1 = inlined_call_operand.hbm [shape: f32[16,32], index: 1, kind: input, shape index: {}]   ;;  %s6142_s2 = inlined_call_operand.hbm [shape: f32[4,8,8], index: 2, kind: input, shape index: {}]   ;;  %s6143_s3 = inlined_call_operand.vmem [shape: f32[2,8], index: 3, kind: input, shape index: {}]   ;;  %s6144_s4 = inlined_call_operand.vmem [shape: f32[2,8], index: 4, kind: input, shape index: {}]   ;;  %s6145_s5 = inlined_call_operand.vmem [shape: f32[1,32], index: 5, kind: input, shape index: {}]   ;;  %s6146_s6 = inlined_call_operand.vmem [shape: f32[2,32,96], index: 6, kind: input, shape index: {}]   ;;  %s6147_s7 = inlined_call_operand.vmem [shape: f32[2,32,32], index: 7, kind: input, shape index: {}]   ;;  %s6148_s8 = inlined_call_operand.vmem [shape: f32[2,32,32], index: 8, kind: input, shape index: {}]   ;;  %s6149_s9 = inlined_call_operand.hbm [shape: f32[2,32,64], index: 9, kind: input, shape index: {}]   ;;  %s6150_s10 = inlined_call_operand.hbm [shape: f32[2,32,32], index: 10, kind: input, shape index: {}]   ;;  %s6151_s11 = inlined_call_operand.hbm [shape: f32[2,32,128], index: 11, kind: input, shape index: {}]   ;;  %s6152_s12 = inlined_call_operand.vmem [shape: f32[2,64,32], index: 12, kind: input, shape index: {}]   ;;  %s6153_s13 = inlined_call_operand.hbm [shape: f32[16,32], index: 13, kind: output, shape index: {}]  }
   0x1   :  { %6166 = sst [smem:[#allocation24_spill]] %s6140_s0 }
   0x2   :  { %6167 = sst [smem:[#allocation25_spill]] %s6141_s1 }
   0x3   :  { %6168 = sst [smem:[#allocation26_spill]] %s6143_s3 }
   0x4   :  { %6169 = sst [smem:[#allocation27_spill]] %s6144_s4 }
   0x5   :  { %6170 = sst [smem:[#allocation28_spill]] %s6145_s5 }
   0x6   :  { %6171 = sst [smem:[#allocation29_spill]] %s6152_s12 }
   0x7   :  { %6172 = sst [smem:[#allocation30_spill]] %s6153_s13 }
   0x8   :  { %18 = vsyncpa [#allocation6], 0 }
   0x9   :  { %19 = vsyncpa [#allocation9], 0 }
   0xa   :  { %20 = vsyncpa [#allocation12], 0 }
   0xb   :  { %22 = vsyncpa [#allocation12 + $0x1], 0 }
   0xc   :  { %23 = vsyncpa [#allocation15], 0 }
   0xd   :  { %25 = vsyncpa [#allocation15 + $0x1], 0 }
   0xe   :  { %26 = vsyncpa [#allocation7], 0  ;;  %s5366_s25 = smov 0   ;;  %s5368_s26 = smov 0  }
   0xf   :  { %s5370_s27 = smov 0   ;;  %s5372_s28 = smov 0  }
  0x10 LB: > { %s5385_s29 = sadd.s32 4294967295, %s5271_s28   ;;  %s5388_s30 = sadd.s32 1, %s5271_s28   ;;  %s5271_s28 = sphi %s5372_s28, %s6202_s28   ;;  %s5267_s27 = sphi %s5370_s27, %s6206_s27   ;;  %s5263_s26 = sphi %s5368_s26, %s6205_s26   ;;  %s5259_s25 = sphi %s5366_s25, %s6204_s25  }
  0x11   : > { %6173 = sst [smem:[#allocation22_spill]] %s5388_s30  ;;  %s240_s14 = ssub.s32 %s5271_s28, %s5388_s30 }
  0x12   : > { %s243_s15 = sadd.s32 1, %s5267_s27  ;;  %p241_p0 = scmp.eq.s32.totalorder %s240_s14, 0 }
  0x13   : > { %p250_p1 = scmp.ne.s32.totalorder %s5267_s27, %s5263_s26  ;;  %p251_p2 = scmp.eq.s32.totalorder %s5271_s28, 0 }
  0x14   : > { %p256_p3 = scmp.ne.s32.totalorder %s5263_s26, %s5259_s25  ;;  %p6158_p5 = scmp.eq.s32.totalorder %s5385_s29, 0 }
  0x15   : > { %s5398_s16 = scalar_select %p241_p0, %s5267_s27, %s243_s15  }
  0x16   : > { %p5400_p4 = por %p251_p2, %p250_p1  ;;  %p4388_p6 = scmp.ge.s32.totalorder %s5271_s28, 1 }
  0x17   : > { %6174 = sst [smem:[#allocation23_spill]] %s5398_s16  ;;  %p366_p7 = scmp.lt.s32.totalorder %s5271_s28, 3 }
  0x18   : > { %p5409_p8 = por %p6158_p5, %p256_p3  ;;  %s5273_s20 = smov [#allocation8]  }
  0x19   : > { %p5414_p10 = pnand %p4388_p6, %p366_p7  ;;  %s391_s21 = sshll.u32 %s5273_s20, 4  ;;  %s392_s21 = int_to_ptr.vmem [resolvable:$true] %s391_s21 }
  0x1a   : > { %s6176_s18 = scalar_select %p5409_p8, 1, 0 }
  0x1b   : > { %s6177_s19 = scalar_select %p5414_p10, 1, 0 }
  0x1c   : > { %p4870_p11 = pneg %p5414_p10  ;;  %p4893_p13 = scmp.lt.s32.totalorder %s5271_s28, 2 }
  0x1d   : > { %s451_s23 = sand.u32 1, %s5271_s28   ;;  %s5046_s25 = scalar_lea.vmem %s392_s21, 256 }
  0x1e   : > { %p5422_p12 = pnand %p4870_p11, %p6158_p5  ;;  %p5047_p1 = scmp.ne.s32.totalorder %s392_s21, %s5046_s25 }
  0x1f   : > { %p5054_p6 = scmp.lt.s32.totalorder %s392_s21, %s392_s21  ;;  %p5055_p7 = scmp.lt.s32.totalorder %s5046_s25, %s5046_s25 }
  0x20   : > { %s6178_s22 = scalar_select %p5422_p12, 1, 0 }
  0x21   : > { %p6161_p0 = pneg %p5422_p12  ;;  %p5056_p9 = por %p5055_p7, %p5054_p6 }
  0x23   : > { %p5049_p2 = pnand %p5047_p1, %p6161_p0 }
  0x25   : > { %p5050_p3 = pneg %p5049_p2 }
  0x27   : > { %p5057_p11 = pnand %p5056_p9, %p5050_p3 }
  0x29   : > { %5060 = shalt.err (!%p5057_p11)
}
  0x2a   : > { %s6156_s14 = smov 128   ;;  %s6159_s15 = smov 8  }
  0x2b   : > { %s6179_s1 = sld [smem:[#allocation25_spill]]  ;;  %s6180_s16 = sand.u32 1, %s5267_s27  }
  0x2c   : > { %s5444_s25 = sshll.u32 %s6180_s16, 5  ;;  %s5447_s30 = sshll.u32 %s5271_s28, 9 }
  0x2d   : > { %s5453_s4 = scalar_lea.hbm %s6149_s9, %s5447_s30  ;;  %s455_s3 = scalar_lea.vmem [#allocation11], %s5444_s25 }
  0x2e   : > { %s462_s12 = sshll.u32 %s455_s3, 4  ;;  %p5460_p9 = pnand %p4893_p13, %p5400_p4  ;;  %s5464_s12 = int_to_ptr.vmem [resolvable:$true] %s462_s12 }
  0x2f   : > { %s5276_s16 = smov [#allocation5]   ;;  %s5468_s5 = scalar_lea.sflag [#allocation12], %s451_s23 }
  0x30   : > { %s5466_s24 = sshll.u32 %s5276_s16, 4  ;;  %s5061_s13 = scalar_lea.hbm %s5453_s4, 512  ;;  %s379_s24 = int_to_ptr.vmem [resolvable:$true] %s5466_s24 }
  0x31   : > { %4876 = dma.hbm_to_vmem [thread:$0]  (!%p5422_p12), %s6179_s1, 256, %s392_s21, [#allocation9], %s6156_s14, %s6156_s14, %s6159_s15  }
  0x32   : > { %p5062_p1 = scmp.ne.s32.totalorder %s5453_s4, %s5061_s13  ;;  %p5474_p2 = pneg %p5460_p9 }
  0x33   : > { %s5066_s17 = scalar_lea.hbm %s6149_s9, 1024  ;;  %p5067_p3 = scmp.lt.s32.totalorder %s5453_s4, %s6149_s9 }
  0x34   : > { %p5064_p4 = pnand %p5474_p2, %p5062_p1  ;;  %p5068_p6 = scmp.lt.s32.totalorder %s5066_s17, %s5061_s13 }
  0x36   : > { %p5065_p13 = pneg %p5064_p4  ;;  %p5069_p7 = por %p5068_p6, %p5067_p3 }
  0x38   : > { %p5070_p11 = pnand %p5069_p7, %p5065_p13 }
  0x3a   : > { %5073 = shalt.err (!%p5070_p11)
}
  0x3b   : > { %s5074_s23 = scalar_lea.vmem %s5464_s12, 512  ;;  %s5277_s15 = smov [#allocation11]  }
  0x3c   : > { %p5075_p5 = scmp.ne.s32.totalorder %s5464_s12, %s5074_s23  ;;  %s5079_s3 = sshll.u32 %s5277_s15, 4  ;;  %s5080_s3 = int_to_ptr.vmem [resolvable:$false] %s5079_s3 }
  0x3d   : > { %s5081_s28 = scalar_lea.vmem %s5080_s3, 1024  ;;  %p5082_p0 = scmp.lt.s32.totalorder %s5464_s12, %s5080_s3 }
  0x3e   : > { %p5077_p1 = pnand %p5075_p5, %p5474_p2  ;;  %p5083_p8 = scmp.lt.s32.totalorder %s5081_s28, %s5074_s23 }
  0x40   : > { %p5078_p4 = pneg %p5077_p1  ;;  %p5084_p10 = por %p5083_p8, %p5082_p0 }
  0x42   : > { %p5085_p12 = pnand %p5084_p10, %p5078_p4 }
  0x44   : > { %5088 = shalt.err (!%p5085_p12)
}
  0x45   : > { %s6183_s14 = smov 8   ;;  %s6184_s13 = smov 128  }
  0x46   : > { %4883 = dma.hbm_to_vmem [thread:$0]  (!%p5460_p9), %s5453_s4, 512, %s5464_s12, %s5468_s5, %s6184_s13, %s6184_s13, %s6183_s14  }
  0x47   : > { %s5100_s15 = scalar_lea.vmem %s379_s24, 256  ;;  %p6185_p13 = scmp.ne.s32.totalorder %s6178_s22, 0 }
  0x48   : > { %p5101_p5 = scmp.ne.s32.totalorder %s379_s24, %s5100_s15  ;;  %p5108_p10 = scmp.lt.s32.totalorder %s379_s24, %s379_s24 }
  0x49   : > { %p6186_p3 = pneg %p6185_p13  ;;  %p5109_p12 = scmp.lt.s32.totalorder %s5100_s15, %s5100_s15 }
  0x4b   : > { %p5103_p6 = pnand %p5101_p5, %p6186_p3  ;;  %p5110_p0 = por %p5109_p12, %p5108_p10 }
  0x4d   : > { %p5104_p8 = pneg %p5103_p6 }
  0x4f   : > { %p5111_p7 = pnand %p5110_p0, %p5104_p8 }
  0x51   : > { %5114 = shalt.err (!%p5111_p7)
}
  0x52   : > { %s6187_s0 = sld [smem:[#allocation24_spill]]  ;;  %s5278_s4 = smov [#allocation10]  }
  0x53   : > { %s404_s12 = sshll.u32 %s5278_s4, 4  ;;  %s5516_s28 = scalar_lea.hbm %s6150_s10, %s5447_s30  ;;  %s405_s12 = int_to_ptr.vmem [resolvable:$true] %s404_s12 }
  0x54   : > { %s5126_s15 = scalar_lea.vmem %s405_s12, 512  ;;  %p6188_p1 = pmov %p6186_p3 }
  0x55   : > { %p5127_p11 = scmp.ne.s32.totalorder %s405_s12, %s5126_s15  ;;  %p5134_p3 = scmp.lt.s32.totalorder %s405_s12, %s405_s12 }
  0x56   : > { %p5135_p6 = scmp.lt.s32.totalorder %s5126_s15, %s5126_s15 }
  0x57   : > { %p5129_p4 = pnand %p5127_p11, %p6188_p1 }
  0x58   : > { %4873 = dma.hbm_to_vmem [thread:$0]  (!%p6185_p13), %s6187_s0, 256, %s379_s24, [#allocation6], %s6184_s13, %s6184_s13, %s6183_s14  }
  0x59   : > { %p5130_p5 = pneg %p5129_p4  ;;  %p5136_p8 = por %p5135_p6, %p5134_p3 }
  0x5b   : > { %p5137_p10 = pnand %p5136_p8, %p5130_p5 }
  0x5d   : > { %5140 = shalt.err (!%p5137_p10)
}
  0x5e   : > { %4879 = dma.hbm_to_vmem [thread:$0]  (!%p6185_p13), %s6142_s2, 512, %s405_s12, [#allocation9], %s6184_s13, %s6184_s13, %s6183_s14  }
  0x5f   : > { %s476_s16 = scalar_lea.vmem [#allocation13], %s5444_s25  ;;  %s5141_s23 = scalar_lea.hbm %s5516_s28, 512 }
  0x60   : > { %s483_s4 = sshll.u32 %s476_s16, 4  ;;  %p5142_p12 = scmp.ne.s32.totalorder %s5516_s28, %s5141_s23  ;;  %s484_s4 = int_to_ptr.vmem [resolvable:$true] %s483_s4 }
  0x61   : > { %s5146_s15 = scalar_lea.hbm %s6150_s10, 1024  ;;  %p5147_p11 = scmp.lt.s32.totalorder %s5516_s28, %s6150_s10 }
  0x62   : > { %p5144_p0 = pnand %p5142_p12, %p5474_p2  ;;  %p5148_p1 = scmp.lt.s32.totalorder %s5146_s15, %s5141_s23 }
  0x64   : > { %p5145_p7 = pneg %p5144_p0  ;;  %p5149_p4 = por %p5148_p1, %p5147_p11 }
  0x66   : > { %p5150_p5 = pnand %p5149_p4, %p5145_p7 }
  0x68   : > { %5153 = shalt.err (!%p5150_p5)
}
  0x69   : > { %s5154_s12 = scalar_lea.vmem %s484_s4, 512  ;;  %s5279_s17 = smov [#allocation13]  }
  0x6a   : > { %p5155_p13 = scmp.ne.s32.totalorder %s484_s4, %s5154_s12  ;;  %s5159_s16 = sshll.u32 %s5279_s17, 4  ;;  %s5160_s16 = int_to_ptr.vmem [resolvable:$false] %s5159_s16 }
  0x6b   : > { %s5161_s1 = scalar_lea.vmem %s5160_s16, 1024  ;;  %p5162_p8 = scmp.lt.s32.totalorder %s484_s4, %s5160_s16 }
  0x6c   : > { %p5157_p3 = pnand %p5155_p13, %p5474_p2  ;;  %p5163_p10 = scmp.lt.s32.totalorder %s5161_s1, %s5154_s12 }
  0x6e   : > { %p5158_p6 = pneg %p5157_p3  ;;  %p5164_p12 = por %p5163_p10, %p5162_p8 }
  0x70   : > { %p5165_p0 = pnand %p5164_p12, %p5158_p6 }
  0x72   : > { %5168 = shalt.err (!%p5165_p0)
}
  0x73   : > { %4886 = dma.hbm_to_vmem [thread:$0]  (!%p5460_p9), %s5516_s28, 512, %s484_s4, %s5468_s5, %s6184_s13, %s6184_s13, %s6183_s14  }
  0x74   : > { %s5554_s22 = scalar_lea.hbm %s6151_s11, %s5447_s30  ;;  %s497_s1 = scalar_lea.vmem [#allocation14], %s5444_s25 }
  0x75   : > { %s504_s3 = sshll.u32 %s497_s1, 4  ;;  %s6189_s15 = sand.u32 1, %s5267_s27   ;;  %s5557_s3 = int_to_ptr.vmem [resolvable:$true] %s504_s3 }
  0x76   : > { %s494_s24 = scalar_lea.sflag [#allocation15], %s6189_s15  ;;  %s5169_s12 = scalar_lea.hbm %s5554_s22, 512 }
  0x77   : > { %p5170_p7 = scmp.ne.s32.totalorder %s5554_s22, %s5169_s12  ;;  %s5174_s4 = scalar_lea.hbm %s6151_s11, 1024 }
  0x78   : > { %p5175_p4 = scmp.lt.s32.totalorder %s5554_s22, %s6151_s11  ;;  %p5176_p5 = scmp.lt.s32.totalorder %s5174_s4, %s5169_s12 }
  0x79   : > { %p5172_p11 = pnand %p5170_p7, %p5474_p2 }
  0x7a   : > { %p5177_p13 = por %p5176_p5, %p5175_p4 }
  0x7b   : > { %p5173_p1 = pneg %p5172_p11 }
  0x7d   : > { %p5178_p3 = pnand %p5177_p13, %p5173_p1 }
  0x7f   : > { %5181 = shalt.err (!%p5178_p3)
}
  0x80   : > { %s5182_s25 = scalar_lea.vmem %s5557_s3, 512  ;;  %s5280_s16 = smov [#allocation14]  }
  0x81   : > { %p5183_p6 = scmp.ne.s32.totalorder %s5557_s3, %s5182_s25  ;;  %s5187_s0 = sshll.u32 %s5280_s16, 4  ;;  %s5188_s0 = int_to_ptr.vmem [resolvable:$false] %s5187_s0 }
  0x82   : > { %s5189_s23 = scalar_lea.vmem %s5188_s0, 1024  ;;  %p5190_p12 = scmp.lt.s32.totalorder %s5557_s3, %s5188_s0 }
  0x83   : > { %p5185_p8 = pnand %p5183_p6, %p5474_p2  ;;  %p5191_p0 = scmp.lt.s32.totalorder %s5189_s23, %s5182_s25 }
  0x85   : > { %p5186_p10 = pneg %p5185_p8  ;;  %p5192_p7 = por %p5191_p0, %p5190_p12 }
  0x87   : > { %p5193_p11 = pnand %p5192_p7, %p5186_p10 }
  0x89   : > { %5196 = shalt.err (!%p5193_p11)
}
  0x8a   : > { %4889 = dma.hbm_to_vmem [thread:$0]  (!%p5460_p9), %s5554_s22, 512, %s5557_s3, %s494_s24, %s6184_s13, %s6184_s13, %s6183_s14  }
  0x8b   : > { %p6190_p2 = scmp.ne.s32.totalorder %s6177_s19, 0 }
  0x8c   : > { %p6191_p1 = scmp.eq.s32.totalorder (!%p6190_p2), %s5385_s29, 0 }
  0x8d   : > { %524 = sbr.rel (%p6190_p2) target bundleno = 4168 (0x1048), region = 72 }
  0x92   : > { %5238 = dma.done.wait (%p6191_p1), [#allocation6], 256   ;;  %p6192_p4 = pmov %p6191_p1 }
  0x93   : > { %p6193_p5 = pmov %p6191_p1 }
  0x94   : > { %5240 = vsyncadd (%p6192_p4), [#allocation6], 4294967040 }
  0x95   : > { %5242 = dma.done.wait (%p6193_p5), [#allocation9], 768   ;;  %p6194_p13 = pmov %p6191_p1 }
  0x96   : > { %s538_s21 = sand.u32 1, %s5385_s29   ;;  %s540_s20 = sand.u32 1, %s5263_s26  }
  0x97   : > { %5244 = vsyncadd (%p6194_p13), [#allocation9], 4294966528  ;;  %s4406_s14 = sshll.u32 %s540_s20, 5  ;;  %s539_s19 = scalar_lea.sflag [#allocation12], %s538_s21 }
  0x98   : > { %s5596_s13 = scalar_lea.vmem [#allocation11], %s4406_s14  ;;  %p6195_p9 = scmp.ne.s32.totalorder %s6176_s18, 0 }
  0x9a   : > { %5246 = dma.done.wait (%p6195_p9), %s539_s19, 1024  }
  0x9b   : > { %5248 = vsyncadd (%p6195_p9), %s539_s19, 4294966272  ;;  %s5602_s22 = scalar_lea.vmem [#allocation13], %s4406_s14  ;;  %s557_s1 = scalar_lea.sflag [#allocation15], %s540_s20 }
  0x9c   : > { %s5604_s3 = scalar_lea.vmem [#allocation14], %s4406_s14 }
  0x9d   : > { %5250 = dma.done.wait (%p6195_p9), %s557_s1, 512  }
  0x9e   : > { %5252 = vsyncadd (%p6195_p9), %s557_s1, 4294966784  ;;  %p628_p3 = scmp.lt.s32.totalorder %s5385_s29, 1  ;;  %s6196_s20 = sld [smem:[#allocation29_spill]] }
  0x9f   : > { %p6197_p6 = scmp.ne.s32.totalorder %s5385_s29, 0 }
  0xa0   : > { %s629_s15 = scalar_select %p628_p3, %s5385_s29, 1 }
  0xa1   : > { %651 = sbr.rel (%p6197_p6) target bundleno = 191 (0xbf), region = 100  ;;  %s6199_s5 = sld [smem:[#allocation27_spill]] (!%p6197_p6) }
  0xa2   : > { %s4489_s24 = sshll.u32 %s629_s15, 5  ;;  %s4492_s12 = sshll.u32 %s629_s15, 6 }
  0xa3   : > { %s5615_s4 = scalar_lea.vmem %s6146_s6, %s4489_s24  ;;  %s5620_s25 = scalar_lea.vmem %s6147_s7, %s4489_s24 }
  0xa4   : > { %s5625_s18 = scalar_lea.vmem %s6148_s8, %s4489_s24  ;;  %s5630_s14 = scalar_lea.vmem %s6196_s20, %s4492_s12 }
  0xa5   : > { %s6198_s15 = sld [smem:[#allocation26_spill]] (!%p6197_p6) }
  0xa6   : > { %v652_v0 = vld [vmem:[#allocation5] sm:$0xff]  ;;  %vm654_vm0 = vcmask 261120   ;;  %v653_v1 = vld [vmem:[#allocation5 + $0x8] sm:$0xff]  ;;  %v657_v2 = vlaneseq  ;;  %v5281_v5 = vmov 1966171168   ;;  %v5282_v9 = vmov 0  }
  0xa7   : > { %655 = vst.msk [vmem:[#allocation2] sm:$0xff] %vm654_vm0, %v652_v0  ;;  %656 = vst.msk [vmem:[#allocation2 + $0x8] sm:$0xff] %vm654_vm0, %v653_v1  ;;  %v666_v6 = vunpack.c.l.s4 %v5281_v5  ;;  %v728_v7 = vld [vmem:[%s6199_s5] sm:$0x3]  ;;  %v5283_v11 = vmov -1e+09  }
  0xa8   : > { %v658_v4 = vshrl.u32 %v657_v2, 7  ;;  %vm729_vm2 = vcmp.gt.f32.partialorder %v728_v7, 0.5  ;;  %v660_v16 = vand.u32 127, %v657_v2  ;;  %vm719_vm3 = vcmask 64512   ;;  %v707_v28 = vld [vmem:[#allocation10] sm:$0xff]  ;;  %v708_v31 = vld [vmem:[#allocation10 + $0x8] sm:$0xff] }
  0xa9   : > { %v667_v8 = vunpack.c.0.s8 %v666_v6  ;;  %v730_v12 = vsel %vm729_vm2, 0.0, %v5283_v11  ;;  %v709_v32 = vld [vmem:[#allocation10 + $0x10] sm:$0xff]  ;;  %v710_v33 = vld [vmem:[#allocation10 + $0x18] sm:$0xff] }
  0xaa   : > { %v695_v17 = vsub.s32 0, %v658_v4  ;;  %vm661_vm5 = vcmp.le.s32.totalorder %v660_v16, %v658_v4 }
  0xab   : > { %v662_v3 = vld [vmem:[%s6198_s15] sm:$0x3]  ;;  %v670_v13 = vsub.s32 %v667_v8, %v658_v4 }
  0xac   : > { %vm663_vm1 = vcmp.gt.f32.partialorder %v662_v3, 0.5 }
  0xad   : > { %v664_v10 = vsel %vm663_vm1, 1, %v5282_v9  ;;  %v738_v15 = vrot.slane %v730_v12, %v670_v13 }
  0xae   : > { %v671_v14 = vrot.slane %v664_v10, %v670_v13 }
  0xaf   : > { %v746_v20 = vrot.slane %v738_v15, %v670_v13  ;;  %v739_v21 = vcombine.high %v738_v15, %v738_v15 }
  0xb0   : > { %v679_v18 = vrot.slane %v671_v14, %v670_v13  ;;  %v672_v19 = vcombine.high %v671_v14, %v671_v14 }
  0xb1   : > { %v757_v23 = vrot.slane %v746_v20, %v695_v17  ;;  %v753_v24 = vrot.slane %v739_v21, %v670_v13 }
  0xb2   : > { %vm687_vm4 = vcmp.ne.s32.totalorder %v679_v18, 0  ;;  %v686_v22 = vrot.slane %v672_v19, %v670_v13 }
  0xb3   : > { %v691_v25 = vsel %vm687_vm4, 1, %v5282_v9  ;;  %764 = vst.msk [vmem:[#allocation4] sm:$0xff] %vm719_vm3, %v757_v23  ;;  %766 = vst.msk [vmem:[#allocation4 + $0x10] sm:$0xff] %vm719_vm3, %v757_v23  ;;  %v761_v27 = vrot.slane %v753_v24, %v695_v17 }
  0xb4   : > { %v696_v26 = vrot.slane %v691_v25, %v695_v17  ;;  %vm688_vm6 = vcmp.ne.s32.totalorder %v686_v22, 0  ;;  %768 = vst.msk [vmem:[#allocation4 + $0x20] sm:$0xff] %vm719_vm3, %v757_v23  ;;  %770 = vst.msk [vmem:[#allocation4 + $0x30] sm:$0xff] %vm719_vm3, %v757_v23 }
  0xb5   : > { %v692_v29 = vsel %vm688_vm6, 1, %v5282_v9  ;;  %765 = vst.msk [vmem:[#allocation4 + $0x8] sm:$0xff] %vm719_vm3, %v761_v27  ;;  %767 = vst.msk [vmem:[#allocation4 + $0x18] sm:$0xff] %vm719_vm3, %v761_v27 }
  0xb6   : > { %vm701_vm7 = vcmp.eq.s32.totalorder %v696_v26, 1  ;;  %v700_v30 = vrot.slane %v692_v29, %v695_v17  ;;  %769 = vst.msk [vmem:[#allocation4 + $0x28] sm:$0xff] %vm719_vm3, %v761_v27  ;;  %771 = vst.msk [vmem:[#allocation4 + $0x38] sm:$0xff] %vm719_vm3, %v761_v27 }
  0xb7   : > { %vm703_vm8 = vmand %vm661_vm5, %vm701_vm7 }
  0xb8   : > { %v705_v34 = vsel %vm703_vm8, 0.0, %v5283_v11  ;;  %vm702_vm9 = vcmp.eq.s32.totalorder %v700_v30, 1 }
  0xb9   : > { %v711_v35 = vadd.f32 %v707_v28, %v705_v34  ;;  %vm704_vm10 = vmand %vm661_vm5, %vm702_vm9  ;;  %v713_v36 = vadd.f32 %v708_v31, %v705_v34  ;;  %v715_v37 = vadd.f32 %v709_v32, %v705_v34  ;;  %v717_v38 = vadd.f32 %v710_v33, %v705_v34 }
  0xba   : > { %v706_v39 = vsel %vm704_vm10, 0.0, %v5283_v11 }
  0xbb   : > { %720 = vst.msk [vmem:[#allocation3] sm:$0xff] %vm719_vm3, %v711_v35  ;;  %v712_v40 = vadd.f32 %v707_v28, %v706_v39  ;;  %722 = vst.msk [vmem:[#allocation3 + $0x10] sm:$0xff] %vm719_vm3, %v713_v36  ;;  %v714_v41 = vadd.f32 %v708_v31, %v706_v39  ;;  %v716_v42 = vadd.f32 %v709_v32, %v706_v39 }
  0xbc   : > { %724 = vst.msk [vmem:[#allocation3 + $0x20] sm:$0xff] %vm719_vm3, %v715_v37  ;;  %726 = vst.msk [vmem:[#allocation3 + $0x30] sm:$0xff] %vm719_vm3, %v717_v38  ;;  %v718_v43 = vadd.f32 %v710_v33, %v706_v39 }
  0xbd   : > { %721 = vst.msk [vmem:[#allocation3 + $0x8] sm:$0xff] %vm719_vm3, %v712_v40  ;;  %723 = vst.msk [vmem:[#allocation3 + $0x18] sm:$0xff] %vm719_vm3, %v714_v41 }
  0xbe   : > { %725 = vst.msk [vmem:[#allocation3 + $0x28] sm:$0xff] %vm719_vm3, %v716_v42  ;;  %727 = vst.msk [vmem:[#allocation3 + $0x38] sm:$0xff] %vm719_vm3, %v718_v43 }
  0xbf PF: > { %v5658_v44 = vld [vmem:[#allocation2] sm:$0xff]  ;;  %vm776_vm11 = vcmask 261120   ;;  %v5660_v45 = vld [vmem:[#allocation2 + $0x8] sm:$0xff]  ;;  %v795_v50 = vld [vmem:[%s5615_s4 + $0x18] sm:$0xff]  ;;  %s5284_s28 = smov 120   ;;  %v5286_v2 = vmov 0.0  }
  0xc0   : > { %v774_v46 = vmul.f32 %v5658_v44, %v5658_v44  ;;  %v775_v47 = vmul.f32 %v5660_v45, %v5660_v45  ;;  %v794_v51 = vld [vmem:[%s5615_s4 + $0x10] sm:$0xff]  ;;  %4603 = vmatprep.subr.mxu1 %v795_v50  ;;  %v793_v52 = vld [vmem:[%s5615_s4 + $0x8] sm:$0xff]  ;;  %v792_v53 = vld [vmem:[%s5615_s4] sm:$0xff]  ;;  %s5285_s4 = smov 112   ;;  %4624 = vmatprep.subr.mxu0 %v5286_v2  ;;  %vm5287_vm12 = vmmov 0   ;;  %s5288_s30 = smov 104  }
  0xc1   : > { %4604 = vmatpush3.msra.mxu1 %v795_v50  ;;  %4626 = vmatprep.mubr.msk.f32.mxu0 %vm5287_vm12, %v5286_v2  ;;  %s5289_s17 = smov 96   ;;  %vm901_vm13 = vcmask 64512   ;;  %s5290_s16 = smov 64   ;;  %vm2230_vm14 = vcmask 130048   ;;  %vm2233_vm15 = vcmask 195584   ;;  %vm4089_vm0 = vcmask 523264  }
  0xc2   : > { %v777_v48 = vsel %vm776_vm11, %v774_v46, 0.0  ;;  %v780_v49 = vsel %vm776_vm11, %v775_v47, 0.0  ;;  %4605 = vmatprep.subr.mxu1 %v794_v51  ;;  %v891_v17 = vld [vmem:[#allocation3] sm:$0xff]  ;;  %v893_v31 = vld [vmem:[#allocation3 + $0x10] sm:$0xff]  ;;  %s5291_s0 = smov 8   ;;  %s5292_s23 = smov 16  }
  0xc3   : > { %778 = vadd.xlane.f32.xlu0 %v777_v48  ;;  %4606 = vmatpush3.msra.mxu1 %v794_v51  ;;  %v895_v37 = vld [vmem:[#allocation3 + $0x20] sm:$0xff]  ;;  %v897_v47 = vld [vmem:[#allocation3 + $0x30] sm:$0xff]  ;;  %s5293_s21 = smov 24   ;;  %p4480_p8 = scmp.ne.s32.totalorder %s5385_s29, 1 }
  0xc4   : > { %4607 = vmatprep.subr.mxu1 %v793_v52  ;;  %v892_v21 = vld [vmem:[#allocation3 + $0x8] sm:$0xff]  ;;  %v894_v27 = vld [vmem:[#allocation3 + $0x18] sm:$0xff] }
  0xc5   : > { %4608 = vmatpush3.msra.mxu1 %v793_v52  ;;  %v896_v36 = vld [vmem:[#allocation3 + $0x28] sm:$0xff] }
  0xc6   : > { %4609 = vmatprep.subr.mxu1 %v792_v53 }
  0xc7   : > { %781 = vadd.xlane.f32.xlu0 %v780_v49  ;;  %4610 = vmatpush3.msra.mxu1 %v792_v53  ;;  %v898_v53 = vld [vmem:[#allocation3 + $0x38] sm:$0xff] }
  0xc8   : > { %4614 = vmatprep.subr.mxu1 %v5286_v2 }
 0x14c   : > { %v779_v54 = vpop.xlane.xlu0 %778 }
 0x14d   : > { %v784_v55 = vmul.f32 0.03125, %v779_v54 }
 0x14f   : > { %v786_v56 = vadd.f32 1e-06, %v784_v55 }
 0x150   : > { %v782_v57 = vpop.xlane.xlu0 %781 }
 0x151   : > { %4951 = vrsqrt.f32 %v786_v56  ;;  %v785_v58 = vmul.f32 0.03125, %v782_v57 }
 0x153   : > { %v787_v59 = vadd.f32 1e-06, %v785_v58 }
 0x155   : > { %4953 = vrsqrt.f32 %v787_v59 }
 0x15e   : > { %v4952_v60 = vpop.eup %4951 }
 0x15f   : > { %v790_v61 = vmul.f32 %v4952_v60, %v5658_v44 }
 0x161   : > { %4611 = vmatprep.mubr.msk.f32.mxu1 %vm776_vm11, %v790_v61 }
 0x162   : > { %v4954_v62 = vpop.eup %4953 }
 0x163   : > { %v791_v63 = vmul.f32 %v4954_v62, %v5660_v45 }
 0x165   : > { %4612 = vmatmul.mubr.msk.f32.vlgmr.msra.gmra.mxu1 %vm776_vm11, %v791_v63 }
 0x166   : > { %4616 = vmatprep.mubr.msk.f32.mxu1 %vm5287_vm12, %v5286_v2 }
 0x225   : > { %v5676_v0 = vpop.f32.mrf.mxu1 }
 0x226   : > { %881 = vrot.lane.b32.xlu1 %v5676_v0, %s5284_s28 }
 0x227   : > { %v5680_v1 = vpop.f32.mrf.mxu1 }
 0x228   : > { %883 = vrot.lane.b32.xlu0 %v5680_v1, %s5285_s4 }
 0x22a   : > { %879 = vrot.lane.b32.xlu1 %v5680_v1, %s5284_s28 }
 0x22e   : > { %885 = vrot.lane.b32.xlu1 %v5676_v0, %s5285_s4 }
 0x232   : > { %887 = vrot.lane.b32.xlu1 %v5680_v1, %s5288_s30 }
 0x236   : > { %889 = vrot.lane.b32.xlu1 %v5676_v0, %s5288_s30 }
 0x23a   : > { %899 = vrot.lane.b32.xlu1 %v5680_v1, %s5289_s17 }
 0x23e   : > { %976 = vrot.lane.b32.xlu1 %v5676_v0, %s5289_s17 }
 0x298   : > { %v5702_v3 = vpop.permute.xlu1 %881 }
 0x299   : > { %1128 = vrot.lane.b32.xlu0 %v5702_v3, %s5289_s17 }
 0x29a   : > { %v5710_v5 = vpop.permute.xlu0 %883 }
 0x29c   : > { %v5706_v4 = vpop.permute.xlu1 %879 }
 0x29d   : > { %1052 = vrot.lane.b32.xlu1 %v5706_v4, %s5289_s17 }
 0x2a0   : > { %v5712_v6 = vpop.permute.xlu1 %885 }
 0x2a1   : > { %1204 = vrot.lane.b32.xlu1 %v5710_v5, %s5289_s17  ;;  %1280 = vrot.lane.b32.xlu0 %v5712_v6, %s5289_s17 }
 0x2a4   : > { %v5718_v7 = vpop.permute.xlu1 %887 }
 0x2a5   : > { %1356 = vrot.lane.b32.xlu1 %v5718_v7, %s5289_s17 }
 0x2a8   : > { %v5722_v8 = vpop.permute.xlu1 %889 }
 0x2a9   : > { %1432 = vrot.lane.b32.xlu0 %v5722_v8, %s5289_s17 }
 0x2ac   : > { %v900_v9 = vpop.permute.xlu1 %899 }
 0x2ad   : > { %4615 = vmatpush3.xpose.msk.msra.mxu1 %vm901_vm13, %v900_v9 }
 0x2ae   : > { %4619 = vmatprep.subr.mxu1 %v5286_v2 }
 0x2b0   : > { %4617 = vmatmul.mubr.msk.f32.vlgmr.msra.gmra.mxu1 %vm901_vm13, %v5680_v1  ;;  %v977_v10 = vpop.permute.xlu1 %976 }
 0x2b1   : > { %4620 = vmatpush3.xpose.msk.msra.mxu1 %vm901_vm13, %v977_v10  ;;  %4621 = vmatprep.mubr.msk.f32.mxu1 %vm5287_vm12, %v5286_v2 }
 0x2b2   : > { %4629 = vmatprep.subr.mxu1 %v5286_v2 }
 0x2b4   : > { %4622 = vmatmul.mubr.msk.f32.vlgmr.msra.gmra.mxu1 %vm901_vm13, %v5676_v0 }
 0x2b5   : > { %4631 = vmatprep.mubr.msk.f32.mxu1 %vm5287_vm12, %v5286_v2 }
 0x30b   : > { %v1129_v11 = vpop.permute.xlu0 %1128 }
 0x30c   : > { %4630 = vmatpush3.xpose.msk.msra.mxu1 %vm901_vm13, %v1129_v11 }
 0x30d   : > { %4639 = vmatprep.subr.mxu1 %v5286_v2 }
 0x30f   : > { %4632 = vmatmul.mubr.msk.f32.vlgmr.msra.gmra.mxu1 %vm901_vm13, %v5702_v3  ;;  %v1053_v12 = vpop.permute.xlu1 %1052 }
 0x310   : > { %4625 = vmatpush3.xpose.msk.msra.mxu0 %vm901_vm13, %v1053_v12  ;;  %4641 = vmatprep.mubr.msk.f32.mxu1 %vm5287_vm12, %v5286_v2 }
 0x311   : > { %4634 = vmatprep.subr.mxu0 %v5286_v2 }
 0x313   : > { %v1281_v13 = vpop.permute.xlu0 %1280  ;;  %4627 = vmatmul.mubr.msk.f32.vlgmr.msra.gmra.mxu0 %vm901_vm13, %v5706_v4  ;;  %v1205_v14 = vpop.permute.xlu1 %1204 }
 0x314   : > { %4635 = vmatpush3.xpose.msk.msra.mxu0 %vm901_vm13, %v1205_v14  ;;  %4640 = vmatpush3.xpose.msk.msra.mxu1 %vm901_vm13, %v1281_v13 }
 0x315   : > { %4636 = vmatprep.mubr.msk.f32.mxu0 %vm5287_vm12, %v5286_v2  ;;  %4644 = vmatprep.subr.mxu0 %v5286_v2 }
 0x316   : > { %4649 = vmatprep.subr.mxu1 %v5286_v2 }
 0x317   : > { %4637 = vmatmul.mubr.msk.f32.vlgmr.msra.gmra.mxu0 %vm901_vm13, %v5710_v5  ;;  %4642 = vmatmul.mubr.msk.f32.vlgmr.msra.gmra.mxu1 %vm901_vm13, %v5712_v6  ;;  %v1357_v15 = vpop.permute.xlu1 %1356 }
 0x318   : > { %4645 = vmatpush3.xpose.msk.msra.mxu0 %vm901_vm13, %v1357_v15  ;;  %4646 = vmatprep.mubr.msk.f32.mxu0 %vm5287_vm12, %v5286_v2 }
 0x319   : > { %4651 = vmatprep.mubr.msk.f32.mxu1 %vm5287_vm12, %v5286_v2  ;;  %4654 = vmatprep.subr.mxu0 %v5286_v2 }
 0x31b   : > { %v1433_v16 = vpop.permute.xlu0 %1432  ;;  %4647 = vmatmul.mubr.msk.f32.vlgmr.msra.gmra.mxu0 %vm901_vm13, %v5718_v7 }
 0x31c   : > { %4650 = vmatpush3.xpose.msk.msra.mxu1 %vm901_vm13, %v1433_v16  ;;  %4656 = vmatprep.mubr.msk.f32.mxu0 %vm5287_vm12, %v5286_v2 }
 0x31d   : > { %4659 = vmatprep.subr.mxu1 %v5286_v2 }
 0x31f   : > { %4652 = vmatmul.mubr.msk.f32.vlgmr.msra.gmra.mxu1 %vm901_vm13, %v5722_v8 }
 0x320   : > { %4661 = vmatprep.mubr.msk.f32.mxu1 %vm5287_vm12, %v5286_v2 }
 0x370   : > { %v972_v18 = vpop.f32.mrf.mxu1 }
 0x371   : > { %v973_v19 = vadd.f32 %v972_v18, %v891_v17 }
 0x372   : > { %v4618_v20 = vpop.f32.mrf.mxu1 }
 0x373   : > { %v1508_v22 = vsel %vm901_vm13, %v973_v19, -inf }
 0x374   : > { %1509 = vmax.xlane.f32.xlu1 %v1508_v22  ;;  %v1048_v23 = vpop.f32.mrf.mxu1 }
 0x375   : > { %v1049_v24 = vadd.f32 %v1048_v23, %v892_v21 }
 0x376   : > { %v4623_v25 = vpop.f32.mrf.mxu1 }
 0x377   : > { %v1511_v26 = vsel %vm901_vm13, %v1049_v24, -inf }
 0x378   : > { %1512 = vmax.xlane.f32.xlu0 %v1511_v26 }
 0x3cf   : > { %v1200_v28 = vpop.f32.mrf.mxu1 }
 0x3d0   : > { %v1201_v29 = vadd.f32 %v1200_v28, %v894_v27 }
 0x3d1   : > { %v4633_v30 = vpop.f32.mrf.mxu1 }
 0x3d2   : > { %v1517_v32 = vsel %vm901_vm13, %v1201_v29, -inf }
 0x3d3   : > { %1518 = vmax.xlane.f32.xlu1 %v1517_v32  ;;  %v1124_v33 = vpop.f32.mrf.mxu0 }
 0x3d4   : > { %v1125_v34 = vadd.f32 %v1124_v33, %v893_v31 }
 0x3d5   : > { %v4628_v35 = vpop.f32.mrf.mxu0 }
 0x3d6   : > { %v1514_v38 = vsel %vm901_vm13, %v1125_v34, -inf }
 0x3d7   : > { %v1352_v39 = vpop.f32.mrf.mxu1  ;;  %1515 = vmax.xlane.f32.xlu0 %v1514_v38  ;;  %v1276_v40 = vpop.f32.mrf.mxu0 }
 0x3d8   : > { %v1353_v41 = vadd.f32 %v1352_v39, %v896_v36  ;;  %v1277_v42 = vadd.f32 %v1276_v40, %v895_v37 }
 0x3d9   : > { %v4638_v43 = vpop.f32.mrf.mxu0  ;;  %v4643_v46 = vpop.f32.mrf.mxu1 }
 0x3da   : > { %v1523_v48 = vsel %vm901_vm13, %v1353_v41, -inf  ;;  %v1520_v49 = vsel %vm901_vm13, %v1277_v42, -inf }
 0x3db   : > { %1524 = vmax.xlane.f32.xlu1 %v1523_v48  ;;  %1521 = vmax.xlane.f32.xlu0 %v1520_v49  ;;  %v1428_v50 = vpop.f32.mrf.mxu0 }
 0x3dc   : > { %v1429_v51 = vadd.f32 %v1428_v50, %v897_v47 }
 0x3dd   : > { %v4648_v52 = vpop.f32.mrf.mxu0 }
 0x3de   : > { %v1526_v54 = vsel %vm901_vm13, %v1429_v51, -inf }
 0x3df   : > { %v1504_v55 = vpop.f32.mrf.mxu1  ;;  %1527 = vmax.xlane.f32.xlu0 %v1526_v54 }
 0x3e0   : > { %v1505_v56 = vadd.f32 %v1504_v55, %v898_v53 }
 0x3e1   : > { %v4653_v57 = vpop.f32.mrf.mxu1 }
 0x3e2   : > { %v1529_v58 = vsel %vm901_vm13, %v1505_v56, -inf }
 0x3e3   : > { %1530 = vmax.xlane.f32.xlu1 %v1529_v58 }
 0x3f4   : > { %1672 = vrot.lane.b32.xlu1 %v5676_v0, %s5290_s16 }
 0x3f5   : > { %1596 = vrot.lane.b32.xlu0 %v5680_v1, %s5290_s16 }
 0x3f8   : > { %1748 = vrot.lane.b32.xlu1 %v5706_v4, %s5290_s16 }
 0x3f9   : > { %1824 = vrot.lane.b32.xlu0 %v5702_v3, %s5290_s16 }
 0x3fc   : > { %1900 = vrot.lane.b32.xlu1 %v5710_v5, %s5290_s16 }
 0x3fd   : > { %1976 = vrot.lane.b32.xlu0 %v5712_v6, %s5290_s16  ;;  %v1510_v59 = vpop.xlane.xlu1 %1509 }
 0x3fe   : > { %v1532_v60 = vsub.f32 %v973_v19, %v1510_v59 }
 0x400   : > { %v1540_v62 = vmul.f32 1.442695, %v1532_v60 }
 0x401   : > { %v1513_v61 = vpop.xlane.xlu0 %1512 }
 0x402   : > { %v1533_v63 = vsub.f32 %v1049_v24, %v1513_v61  ;;  %4955 = vpow2.f32 %v1540_v62 }
 0x404   : > { %v1542_v0 = vmul.f32 1.442695, %v1533_v63 }
 0x406   : > { %4957 = vpow2.f32 %v1542_v0 }
 0x40f   : > { %v5794_v1 = vpop.eup %4955 }
 0x410   : > { %v1556_v4 = vsel %vm901_vm13, %v5794_v1, 0.0 }
 0x413   : > { %v5798_v3 = vpop.eup %4957 }
 0x414   : > { %v1559_v5 = vsel %vm901_vm13, %v5798_v3, 0.0 }
 0x41c   : > { %1557 = vadd.xlane.f32.xlu0 %v1556_v4 }
 0x420   : > { %1560 = vadd.xlane.f32.xlu1 %v1559_v5 }
 0x45c   : > { %v1519_v6 = vpop.xlane.xlu1 %1518 }
 0x45d   : > { %v1535_v9 = vsub.f32 %v1201_v29, %v1519_v6 }
 0x45f   : > { %v1546_v10 = vmul.f32 1.442695, %v1535_v9 }
 0x460   : > { %v1516_v11 = vpop.xlane.xlu0 %1515 }
 0x461   : > { %4959 = vpow2.f32 %v1546_v10  ;;  %v1534_v12 = vsub.f32 %v1125_v34, %v1516_v11 }
 0x463   : > { %v1544_v13 = vmul.f32 1.442695, %v1534_v12 }
 0x464   : > { %v1522_v14 = vpop.xlane.xlu0 %1521  ;;  %v1525_v15 = vpop.xlane.xlu1 %1524 }
 0x465   : > { %4961 = vpow2.f32 %v1544_v13  ;;  %v1536_v16 = vsub.f32 %v1277_v42, %v1522_v14  ;;  %v1537_v17 = vsub.f32 %v1353_v41, %v1525_v15  ;;  %v2239_v13 = vld [vmem:[%s5620_s25 + $0x18] sm:$0xff]  ;;  %v2238_v14 = vld [vmem:[%s5620_s25 + $0x10] sm:$0xff] }
 0x467   : > { %v1548_v18 = vmul.f32 1.442695, %v1536_v16  ;;  %v1550_v19 = vmul.f32 1.442695, %v1537_v17  ;;  %v2237_v16 = vld [vmem:[%s5620_s25 + $0x8] sm:$0xff] }
 0x468   : > { %v1528_v20 = vpop.xlane.xlu0 %1527 }
 0x469   : > { %4963 = vpow2.f32 %v1548_v18  ;;  %v1538_v21 = vsub.f32 %v1429_v51, %v1528_v20 }
 0x46a   : > { %4965 = vpow2.f32 %v1550_v19  ;;  %v2236_v19 = vld [vmem:[%s5620_s25] sm:$0xff] }
 0x46b   : > { %v1552_v22 = vmul.f32 1.442695, %v1538_v21 }
 0x46c   : > { %v1597_v23 = vpop.permute.xlu0 %1596  ;;  %v1531_v24 = vpop.xlane.xlu1 %1530 }
 0x46d   : > { %4967 = vpow2.f32 %v1552_v22  ;;  %v1539_v25 = vsub.f32 %v1505_v56, %v1531_v24  ;;  %4655 = vmatpush3.msra.mxu0 %v1597_v23 }
 0x46e   : > { %v4960_v26 = vpop.eup %4959  ;;  %4664 = vmatprep.subr.mxu0 %v5286_v2 }
 0x46f   : > { %v1554_v27 = vmul.f32 1.442695, %v1539_v25  ;;  %v1565_v28 = vsel %vm901_vm13, %v4960_v26, 0.0 }
 0x470   : > { %1566 = vadd.xlane.f32.xlu1 %v1565_v28  ;;  %v1673_v29 = vpop.permute.xlu1 %1672  ;;  %v1825_v40 = vpop.permute.xlu0 %1824 }
 0x471   : > { %4969 = vpow2.f32 %v1554_v27  ;;  %4660 = vmatpush3.msra.mxu1 %v1673_v29 }
 0x472   : > { %v4962_v30 = vpop.eup %4961  ;;  %4669 = vmatprep.subr.mxu1 %v5286_v2 }
 0x473   : > { %v1562_v31 = vsel %vm901_vm13, %v4962_v30, 0.0 }
 0x474   : > { %1563 = vadd.xlane.f32.xlu0 %v1562_v31  ;;  %v1749_v41 = vpop.permute.xlu1 %1748  ;;  %v1977_v42 = vpop.permute.xlu0 %1976 }
 0x476   : > { %v4964_v32 = vpop.eup %4963 }
 0x477   : > { %v4966_v33 = vpop.eup %4965  ;;  %v1568_v34 = vsel %vm901_vm13, %v4964_v32, 0.0 }
 0x478   : > { %1569 = vadd.xlane.f32.xlu0 %v1568_v34  ;;  %v1571_v35 = vsel %vm901_vm13, %v4966_v33, 0.0  ;;  %v1901_v43 = vpop.permute.xlu1 %1900 }
 0x479   : > { %1572 = vadd.xlane.f32.xlu1 %v1571_v35 }
 0x47a   : > { %v5808_v36 = vpop.eup %4967 }
 0x47b   : > { %v1574_v37 = vsel %vm901_vm13, %v5808_v36, 0.0 }
 0x47c   : > { %1575 = vadd.xlane.f32.xlu0 %v1574_v37 }
 0x47e   : > { %v5812_v38 = vpop.eup %4969 }
 0x47f   : > { %v1577_v39 = vsel %vm901_vm13, %v5812_v38, 0.0 }
 0x480   : > { %1578 = vadd.xlane.f32.xlu1 %v1577_v39 }
 0x491   : > { %2052 = vrot.lane.b32.xlu1 %v5718_v7, %s5290_s16 }
 0x492   : > { %2128 = vrot.lane.b32.xlu0 %v5722_v8, %s5290_s16 }
 0x4a5   : > { %v1558_v46 = vpop.xlane.xlu0 %1557 }
 0x4a6   : > { %4971 = vrcp.f32 %v1558_v46 }
 0x4a9   : > { %v1561_v47 = vpop.xlane.xlu1 %1560 }
 0x4aa   : > { %4973 = vrcp.f32 %v1561_v47 }
 0x4b3   : > { %v4972_v48 = vpop.eup %4971 }
 0x4b4   : > { %v1588_v49 = vmul.f32 %v4972_v48, %v5794_v1 }
 0x4b6   : > { %4657 = vmatmul.mubr.msk.f32.vlgmr.msra.gmra.mxu0 %vm901_vm13, %v1588_v49 }
 0x4b7   : > { %v4974_v50 = vpop.eup %4973  ;;  %4665 = vmatpush3.msra.mxu0 %v1749_v41  ;;  %4666 = vmatprep.mubr.msk.f32.mxu0 %vm5287_vm12, %v5286_v2  ;;  %v2443_v41 = vld [vmem:[%s5596_s13 + $0x18] sm:$0xff] }
 0x4b8   : > { %v1589_v7 = vmul.f32 %v4974_v50, %v5798_v3  ;;  %4674 = vmatprep.subr.mxu0 %v5286_v2 }
 0x4ba   : > { %4662 = vmatmul.mubr.msk.f32.vlgmr.msra.gmra.mxu1 %vm901_vm13, %v1589_v7 }
 0x4bb   : > { %4670 = vmatpush3.msra.mxu1 %v1825_v40  ;;  %4671 = vmatprep.mubr.msk.f32.mxu1 %vm5287_vm12, %v5286_v2 }
 0x4bc   : > { %4679 = vmatprep.subr.mxu1 %v5286_v2 }
 0x4f9   : > { %v1567_v8 = vpop.xlane.xlu1 %1566 }
 0x4fa   : > { %4975 = vrcp.f32 %v1567_v8  ;;  %v2440_v8 = vld [vmem:[%s5596_s13] sm:$0xff] }
 0x4fd   : > { %v1564_v51 = vpop.xlane.xlu0 %1563 }
 0x4fe   : > { %4977 = vrcp.f32 %v1564_v51  ;;  %v2438_v51 = vld [vmem:[#allocation8] sm:$0xff] }
 0x501   : > { %v1570_v52 = vpop.xlane.xlu0 %1569 }
 0x502   : > { %4979 = vrcp.f32 %v1570_v52  ;;  %v1573_v53 = vpop.xlane.xlu1 %1572  ;;  %v2439_v52 = vld [vmem:[#allocation8 + $0x8] sm:$0xff] }
 0x503   : > { %4981 = vrcp.f32 %v1573_v53  ;;  %v2342_v53 = vld [vmem:[%s5625_s18 + $0x18] sm:$0xff] }
 0x505   : > { %v1576_v54 = vpop.xlane.xlu0 %1575 }
 0x506   : > { %4983 = vrcp.f32 %v1576_v54  ;;  %v2341_v54 = vld [vmem:[%s5625_s18 + $0x10] sm:$0xff] }
 0x507   : > { %v4976_v55 = vpop.eup %4975 }
 0x508   : > { %v1591_v56 = vmul.f32 %v4976_v55, %v4960_v26  ;;  %v2340_v55 = vld [vmem:[%s5625_s18 + $0x8] sm:$0xff] }
 0x509   : > { %v1579_v57 = vpop.xlane.xlu1 %1578  ;;  %v2129_v4 = vpop.permute.xlu0 %2128 }
 0x50a   : > { %4985 = vrcp.f32 %v1579_v57  ;;  %4672 = vmatmul.mubr.msk.f32.vlgmr.msra.gmra.mxu1 %vm901_vm13, %v1591_v56  ;;  %v2339_v56 = vld [vmem:[%s5625_s18] sm:$0xff] }
 0x50b   : > { %v4978_v58 = vpop.eup %4977  ;;  %4680 = vmatpush3.msra.mxu1 %v1977_v42  ;;  %4681 = vmatprep.mubr.msk.f32.mxu1 %vm5287_vm12, %v5286_v2 }
 0x50c   : > { %v1590_v59 = vmul.f32 %v4978_v58, %v4962_v30  ;;  %4689 = vmatprep.subr.mxu1 %v5286_v2 }
 0x50d   : > { %v2053_v0 = vpop.permute.xlu1 %2052 }
 0x50e   : > { %4667 = vmatmul.mubr.msk.f32.vlgmr.msra.gmra.mxu0 %vm901_vm13, %v1590_v59 }
 0x50f   : > { %v4980_v60 = vpop.eup %4979  ;;  %4675 = vmatpush3.msra.mxu0 %v1901_v43  ;;  %4676 = vmatprep.mubr.msk.f32.mxu0 %vm5287_vm12, %v5286_v2 }
 0x510   : > { %v4982_v61 = vpop.eup %4981  ;;  %4684 = vmatprep.subr.mxu0 %v5286_v2  ;;  %v1592_v62 = vmul.f32 %v4980_v60, %v4964_v32 }
 0x511   : > { %v1593_v63 = vmul.f32 %v4982_v61, %v4966_v33 }
 0x512   : > { %4677 = vmatmul.mubr.msk.f32.vlgmr.msra.gmra.mxu0 %vm901_vm13, %v1592_v62 }
 0x513   : > { %v4984_v1 = vpop.eup %4983  ;;  %4682 = vmatmul.mubr.msk.f32.vlgmr.msra.gmra.mxu1 %vm901_vm13, %v1593_v63  ;;  %4685 = vmatpush3.msra.mxu0 %v2053_v0 }
 0x514   : > { %4690 = vmatpush3.msra.mxu1 %v2129_v4  ;;  %4686 = vmatprep.mubr.msk.f32.mxu0 %vm5287_vm12, %v5286_v2  ;;  %v1594_v3 = vmul.f32 %v4984_v1, %v5808_v36 }
 0x515   : > { %4691 = vmatprep.mubr.msk.f32.mxu1 %vm5287_vm12, %v5286_v2  ;;  %4694 = vmatprep.subr.mxu0 %v2239_v13 }
 0x516   : > { %4687 = vmatmul.mubr.msk.f32.vlgmr.msra.gmra.mxu0 %vm901_vm13, %v1594_v3  ;;  %4705 = vmatprep.subr.mxu1 %v2342_v53 }
 0x517   : > { %v4986_v5 = vpop.eup %4985  ;;  %4695 = vmatpush3.msra.mxu0 %v2239_v13 }
 0x518   : > { %v1595_v6 = vmul.f32 %v4986_v5, %v5812_v38  ;;  %4696 = vmatprep.subr.mxu0 %v2238_v14 }
 0x519   : > { %4697 = vmatpush3.msra.mxu0 %v2238_v14 }
 0x51a   : > { %4692 = vmatmul.mubr.msk.f32.vlgmr.msra.gmra.mxu1 %vm901_vm13, %v1595_v6  ;;  %4698 = vmatprep.subr.mxu0 %v2237_v16 }
 0x51b   : > { %4699 = vmatpush3.msra.mxu0 %v2237_v16  ;;  %4706 = vmatpush3.msra.mxu1 %v2342_v53  ;;  %v2545_v53 = vld [vmem:[#allocation4 + $0x30] sm:$0xff] }
 0x51c   : > { %4700 = vmatprep.subr.mxu0 %v2236_v19  ;;  %4707 = vmatprep.subr.mxu1 %v2341_v54 }
 0x51d   : > { %4701 = vmatpush3.msra.mxu0 %v2236_v19  ;;  %4708 = vmatpush3.msra.mxu1 %v2341_v54 }
 0x51e   : > { %4716 = vmatprep.subr.mxu0 %v2443_v41  ;;  %4709 = vmatprep.subr.mxu1 %v2340_v55 }
 0x51f   : > { %4710 = vmatpush3.msra.mxu1 %v2340_v55 }
 0x520   : > { %4711 = vmatprep.subr.mxu1 %v2339_v56 }
 0x521   : > { %4712 = vmatpush3.msra.mxu1 %v2339_v56 }
 0x522   : > { %4727 = vmatprep.subr.mxu1 %v5286_v2 }
 0x576   : > { %v1668_v9 = vpop.f32.mrf.mxu0 }
 0x578   : > { %v4658_v10 = vpop.f32.mrf.mxu0 }
 0x57a   : > { %v1744_v11 = vpop.f32.mrf.mxu1 }
 0x57c   : > { %v4663_v12 = vpop.f32.mrf.mxu1 }
 0x5ca   : > { %v1896_v15 = vpop.f32.mrf.mxu1 }
 0x5cb   : > { %2208 = vrot.lane.b32.xlu0 %v1896_v15, %s5291_s0 }
 0x5cc   : > { %v4673_v17 = vpop.f32.mrf.mxu1 }
 0x5ce   : > { %v1820_v18 = vpop.f32.mrf.mxu0 }
 0x5cf   : > { %2206 = vrot.lane.b32.xlu1 %v1820_v18, %s5291_s0 }
 0x5d0   : > { %v4668_v20 = vpop.f32.mrf.mxu0 }
 0x5d2   : > { %v1972_v21 = vpop.f32.mrf.mxu0 }
 0x5d3   : > { %v2048_v22 = vpop.f32.mrf.mxu1  ;;  %2214 = vrot.lane.b32.xlu1 %v1972_v21, %s5292_s23 }
 0x5d4   : > { %2216 = vrot.lane.b32.xlu0 %v2048_v22, %s5292_s23  ;;  %v4678_v23 = vpop.f32.mrf.mxu0  ;;  %v2539_v22 = vld [vmem:[#allocation4] sm:$0xff] }
 0x5d5   : > { %v4683_v24 = vpop.f32.mrf.mxu1 }
 0x5d6   : > { %v2124_v25 = vpop.f32.mrf.mxu0 }
 0x5d7   : > { %2222 = vrot.lane.b32.xlu1 %v2124_v25, %s5293_s21 }
 0x5d8   : > { %v4688_v26 = vpop.f32.mrf.mxu0 }
 0x5d9   : > { %v2540_v26 = vld [vmem:[#allocation4 + $0x8] sm:$0xff] }
 0x5da   : > { %v2200_v27 = vpop.f32.mrf.mxu1 }
 0x5db   : > { %2224 = vrot.lane.b32.xlu0 %v2200_v27, %s5293_s21 }
 0x5dc   : > { %v4693_v28 = vpop.f32.mrf.mxu1 }
 0x63d   : > { %v2209_v30 = vpop.permute.xlu0 %2208 }
 0x63e   : > { %v2229_v37 = vsel %vm901_vm13, %v1744_v11, %v2209_v30 }
 0x641   : > { %v2207_v29 = vpop.permute.xlu1 %2206 }
 0x642   : > { %v2228_v32 = vsel %vm901_vm13, %v1668_v9, %v2207_v29 }
 0x645   : > { %v2215_v31 = vpop.permute.xlu1 %2214 }
 0x646   : > { %v2217_v33 = vpop.permute.xlu0 %2216  ;;  %v2231_v34 = vsel %vm2230_vm14, %v2228_v32, %v2215_v31  ;;  %v2542_v32 = vld [vmem:[#allocation4 + $0x18] sm:$0xff] }
 0x647   : > { %v2232_v38 = vsel %vm2230_vm14, %v2229_v37, %v2217_v33 }
 0x649   : > { %v2223_v35 = vpop.permute.xlu1 %2222 }
 0x64a   : > { %v2234_v36 = vsel %vm2233_vm15, %v2231_v34, %v2223_v35  ;;  %v2541_v34 = vld [vmem:[#allocation4 + $0x10] sm:$0xff] }
 0x64b   : > { %4702 = vmatprep.mubr.msk.f32.mxu0 %vm776_vm11, %v2234_v36 }
 0x64d   : > { %v2225_v39 = vpop.permute.xlu0 %2224 }
 0x64e   : > { %v2235_v40 = vsel %vm2233_vm15, %v2232_v38, %v2225_v39  ;;  %v2544_v38 = vld [vmem:[#allocation4 + $0x28] sm:$0xff] }
 0x64f   : > { %4703 = vmatmul.mubr.msk.f32.vlgmr.msra.gmra.mxu0 %vm776_vm11, %v2235_v40 }
 0x650   : > { %4717 = vmatpush3.msra.mxu0 %v2443_v41  ;;  %4724 = vmatprep.mubr.msk.f32.mxu0 %vm776_vm11, %v2438_v51 }
 0x70f   : > { %v4704_v42 = vpop.f32.mrf.mxu0 }
 0x710   : > { %v5868_v43 = vadd.f32 %v4704_v42, %v5660_v45  ;;  %v2442_v45 = vld [vmem:[%s5596_s13 + $0x10] sm:$0xff] }
 0x711   : > { %v2312_v46 = vpop.f32.mrf.mxu0  ;;  %4718 = vmatprep.subr.mxu0 %v2442_v45 }
 0x712   : > { %v5871_v47 = vadd.f32 %v2312_v46, %v5658_v44  ;;  %v2324_v48 = vmul.f32 %v5868_v43, %v5868_v43  ;;  %4719 = vmatpush3.msra.mxu0 %v2442_v45  ;;  %v2441_v44 = vld [vmem:[%s5596_s13 + $0x8] sm:$0xff]  ;;  %v2543_v46 = vld [vmem:[#allocation4 + $0x20] sm:$0xff]  ;;  %v2546_v45 = vld [vmem:[#allocation4 + $0x38] sm:$0xff] }
 0x713   : > { %4720 = vmatprep.subr.mxu0 %v2441_v44 }
 0x714   : > { %v2328_v49 = vsel %vm776_vm11, %v2324_v48, 0.0  ;;  %v2323_v50 = vmul.f32 %v5871_v47, %v5871_v47  ;;  %4721 = vmatpush3.msra.mxu0 %v2441_v44 }
 0x715   : > { %2329 = vadd.xlane.f32.xlu0 %v2328_v49  ;;  %4722 = vmatprep.subr.mxu0 %v2440_v8 }
 0x716   : > { %v2325_v7 = vsel %vm776_vm11, %v2323_v50, 0.0  ;;  %4723 = vmatpush3.msra.mxu0 %v2440_v8 }
 0x717   : > { %2326 = vadd.xlane.f32.xlu1 %v2325_v7  ;;  %4725 = vmatmul.mubr.msk.f32.vlgmr.msra.gmra.mxu0 %vm776_vm11, %v2439_v52 }
 0x718   : > { %4737 = vmatprep.subr.mxu0 %v5286_v2  ;;  %4739 = vmatprep.mubr.msk.f32.mxu0 %vm5287_vm12, %v5286_v2 }
 0x79e   : > { %v2330_v57 = vpop.xlane.xlu0 %2329 }
 0x79f   : > { %v2332_v58 = vmul.f32 0.03125, %v2330_v57 }
 0x7a0   : > { %v2327_v59 = vpop.xlane.xlu1 %2326 }
 0x7a1   : > { %v2334_v60 = vadd.f32 1e-06, %v2332_v58  ;;  %v2331_v61 = vmul.f32 0.03125, %v2327_v59 }
 0x7a3   : > { %v2333_v62 = vadd.f32 1e-06, %v2331_v61  ;;  %4987 = vrsqrt.f32 %v2334_v60 }
 0x7a5   : > { %4989 = vrsqrt.f32 %v2333_v62 }
 0x7b0   : > { %v4988_v63 = vpop.eup %4987 }
 0x7b1   : > { %v2338_v4 = vmul.f32 %v4988_v63, %v5868_v43 }
 0x7b2   : > { %v4990_v0 = vpop.eup %4989 }
 0x7b3   : > { %v2337_v1 = vmul.f32 %v4990_v0, %v5871_v47 }
 0x7b5   : > { %4713 = vmatprep.mubr.msk.f32.mxu1 %vm776_vm11, %v2337_v1 }
 0x7b6   : > { %4714 = vmatmul.mubr.msk.f32.vlgmr.msra.gmra.mxu1 %vm776_vm11, %v2338_v4 }
 0x7b7   : > { %4729 = vmatprep.mubr.msk.f32.mxu1 %vm5287_vm12, %v5286_v2 }
 0x7d7   : > { %v5898_v3 = vpop.f32.mrf.mxu0 }
 0x7d8   : > { %2533 = vrot.lane.b32.xlu0 %v5898_v3, %s5285_s4  ;;  %2529 = vrot.lane.b32.xlu1 %v5898_v3, %s5284_s28 }
 0x7d9   : > { %v5904_v5 = vpop.f32.mrf.mxu0 }
 0x7da   : > { %4728 = vmatpush3.xpose.msk.msra.mxu1 %vm901_vm13, %v5904_v5 }
 0x7db   : > { %4732 = vmatprep.subr.mxu1 %v5286_v2 }
 0x7dc   : > { %2537 = vrot.lane.b32.xlu0 %v5898_v3, %s5288_s30  ;;  %2531 = vrot.lane.b32.xlu1 %v5904_v5, %s5285_s4 }
 0x7e0   : > { %2527 = vrot.lane.b32.xlu0 %v5904_v5, %s5284_s28  ;;  %2535 = vrot.lane.b32.xlu1 %v5904_v5, %s5288_s30 }
 0x84a   : > { %v5917_v6 = vpop.permute.xlu0 %2533  ;;  %v5937_v13 = vpop.permute.xlu1 %2529 }
 0x84e   : > { %v5919_v9 = vpop.permute.xlu0 %2537  ;;  %v5946_v14 = vpop.permute.xlu1 %2531 }
 0x852   : > { %v5921_v10 = vpop.permute.xlu0 %2527  ;;  %v5948_v15 = vpop.permute.xlu1 %2535 }
 0x853   : > { %4738 = vmatpush3.xpose.msk.msra.mxu0 %vm901_vm13, %v5921_v10 }
 0x854   : > { %4747 = vmatprep.subr.mxu0 %v5286_v2 }
 0x876   : > { %v4715_v11 = vpop.f32.mrf.mxu1 }
 0x877   : > { %2428 = vrot.lane.b32.xlu0 %v4715_v11, %s5284_s28 }
 0x878   : > { %v2415_v12 = vpop.f32.mrf.mxu1 }
 0x879   : > { %2426 = vrot.lane.b32.xlu1 %v2415_v12, %s5284_s28  ;;  %4730 = vmatmul.mubr.msk.f32.vlgmr.msra.gmra.mxu1 %vm901_vm13, %v2415_v12 }
 0x87a   : > { %4733 = vmatpush3.xpose.msk.msra.mxu1 %vm901_vm13, %v5898_v3  ;;  %4734 = vmatprep.mubr.msk.f32.mxu1 %vm5287_vm12, %v5286_v2 }
 0x87b   : > { %2432 = vrot.lane.b32.xlu0 %v4715_v11, %s5285_s4  ;;  %4742 = vmatprep.subr.mxu1 %v5286_v2 }
 0x87d   : > { %2430 = vrot.lane.b32.xlu1 %v2415_v12, %s5285_s4  ;;  %4735 = vmatmul.mubr.msk.f32.vlgmr.msra.gmra.mxu1 %vm901_vm13, %v4715_v11 }
 0x87e   : > { %4743 = vmatpush3.xpose.msk.msra.mxu1 %vm901_vm13, %v5937_v13  ;;  %4744 = vmatprep.mubr.msk.f32.mxu1 %vm5287_vm12, %v5286_v2 }
 0x87f   : > { %2436 = vrot.lane.b32.xlu0 %v4715_v11, %s5288_s30  ;;  %4752 = vmatprep.subr.mxu1 %v5286_v2 }
 0x881   : > { %2434 = vrot.lane.b32.xlu1 %v2415_v12, %s5288_s30 }
 0x8e9   : > { %v2429_v16 = vpop.permute.xlu0 %2428 }
 0x8ea   : > { %4745 = vmatmul.mubr.msk.f32.vlgmr.msra.gmra.mxu1 %vm901_vm13, %v2429_v16 }
 0x8eb   : > { %4753 = vmatpush3.xpose.msk.msra.mxu1 %vm901_vm13, %v5917_v6  ;;  %v2427_v17 = vpop.permute.xlu1 %2426  ;;  %4754 = vmatprep.mubr.msk.f32.mxu1 %vm5287_vm12, %v5286_v2 }
 0x8ec   : > { %4740 = vmatmul.mubr.msk.f32.vlgmr.msra.gmra.mxu0 %vm901_vm13, %v2427_v17  ;;  %4762 = vmatprep.subr.mxu1 %v5286_v2 }
 0x8ed   : > { %4748 = vmatpush3.xpose.msk.msra.mxu0 %vm901_vm13, %v5946_v14  ;;  %v2433_v18 = vpop.permute.xlu0 %2432  ;;  %4749 = vmatprep.mubr.msk.f32.mxu0 %vm5287_vm12, %v5286_v2 }
 0x8ee   : > { %4755 = vmatmul.mubr.msk.f32.vlgmr.msra.gmra.mxu1 %vm901_vm13, %v2433_v18  ;;  %4757 = vmatprep.subr.mxu0 %v5286_v2 }
 0x8ef   : > { %4763 = vmatpush3.xpose.msk.msra.mxu1 %vm901_vm13, %v5919_v9  ;;  %v2431_v19 = vpop.permute.xlu1 %2430  ;;  %4764 = vmatprep.mubr.msk.f32.mxu1 %vm5287_vm12, %v5286_v2 }
 0x8f0   : > { %4750 = vmatmul.mubr.msk.f32.vlgmr.msra.gmra.mxu0 %vm901_vm13, %v2431_v19  ;;  %4772 = vmatprep.subr.mxu1 %v5286_v2 }
 0x8f1   : > { %4758 = vmatpush3.xpose.msk.msra.mxu0 %vm901_vm13, %v5948_v15  ;;  %v2437_v20 = vpop.permute.xlu0 %2436  ;;  %4759 = vmatprep.mubr.msk.f32.mxu0 %vm5287_vm12, %v5286_v2 }
 0x8f2   : > { %4765 = vmatmul.mubr.msk.f32.vlgmr.msra.gmra.mxu1 %vm901_vm13, %v2437_v20  ;;  %4767 = vmatprep.subr.mxu0 %v5286_v2 }
 0x8f3   : > { %v2435_v21 = vpop.permute.xlu1 %2434  ;;  %4774 = vmatprep.mubr.msk.f32.mxu1 %vm5287_vm12, %v5286_v2 }
 0x8f4   : > { %4760 = vmatmul.mubr.msk.f32.vlgmr.msra.gmra.mxu0 %vm901_vm13, %v2435_v21 }
 0x8f5   : > { %4769 = vmatprep.mubr.msk.f32.mxu0 %vm5287_vm12, %v5286_v2 }
 0x939   : > { %v2617_v23 = vpop.f32.mrf.mxu1 }
 0x93a   : > { %v2618_v24 = vadd.f32 %v2617_v23, %v2539_v22 }
 0x93b   : > { %v4731_v25 = vpop.f32.mrf.mxu1 }
 0x93c   : > { %v3139_v27 = vsel %vm901_vm13, %v2618_v24, -inf }
 0x93d   : > { %3140 = vmax.xlane.f32.xlu1 %v3139_v27  ;;  %v2691_v28 = vpop.f32.mrf.mxu1 }
 0x93e   : > { %v2692_v29 = vadd.f32 %v2691_v28, %v2540_v26 }
 0x93f   : > { %v4736_v30 = vpop.f32.mrf.mxu1 }
 0x940   : > { %v3142_v31 = vsel %vm901_vm13, %v2692_v29, -inf }
 0x941   : > { %3143 = vmax.xlane.f32.xlu0 %v3142_v31 }
 0x9aa   : > { %v2839_v33 = vpop.f32.mrf.mxu1 }
 0x9ab   : > { %v2840_v35 = vadd.f32 %v2839_v33, %v2542_v32 }
 0x9ac   : > { %v2765_v36 = vpop.f32.mrf.mxu0  ;;  %v4746_v37 = vpop.f32.mrf.mxu1 }
 0x9ad   : > { %v2766_v39 = vadd.f32 %v2765_v36, %v2541_v34  ;;  %v3148_v40 = vsel %vm901_vm13, %v2840_v35, -inf }
 0x9ae   : > { %3149 = vmax.xlane.f32.xlu1 %v3148_v40  ;;  %v4741_v41 = vpop.f32.mrf.mxu0  ;;  %v2987_v42 = vpop.f32.mrf.mxu1 }
 0x9af   : > { %v2988_v48 = vadd.f32 %v2987_v42, %v2544_v38  ;;  %v3145_v49 = vsel %vm901_vm13, %v2766_v39, -inf }
 0x9b0   : > { %v4756_v50 = vpop.f32.mrf.mxu1  ;;  %3146 = vmax.xlane.f32.xlu0 %v3145_v49  ;;  %v2913_v7 = vpop.f32.mrf.mxu0 }
 0x9b1   : > { %v2914_v44 = vadd.f32 %v2913_v7, %v2543_v46  ;;  %v3154_v8 = vsel %vm901_vm13, %v2988_v48, -inf }
 0x9b2   : > { %3155 = vmax.xlane.f32.xlu1 %v3154_v8  ;;  %v4751_v51 = vpop.f32.mrf.mxu0  ;;  %v3135_v52 = vpop.f32.mrf.mxu1 }
 0x9b3   : > { %v3136_v54 = vadd.f32 %v3135_v52, %v2546_v45  ;;  %v3151_v55 = vsel %vm901_vm13, %v2914_v44, -inf }
 0x9b4   : > { %v4766_v56 = vpop.f32.mrf.mxu1  ;;  %3152 = vmax.xlane.f32.xlu0 %v3151_v55  ;;  %v3061_v57 = vpop.f32.mrf.mxu0 }
 0x9b5   : > { %v3062_v58 = vadd.f32 %v3061_v57, %v2545_v53  ;;  %v3160_v59 = vsel %vm901_vm13, %v3136_v54, -inf }
 0x9b6   : > { %3161 = vmax.xlane.f32.xlu1 %v3160_v59  ;;  %v4761_v60 = vpop.f32.mrf.mxu0 }
 0x9b7   : > { %v3157_v61 = vsel %vm901_vm13, %v3062_v58, -inf }
 0x9b8   : > { %3158 = vmax.xlane.f32.xlu0 %v3157_v61 }
 0x9c6   : > { %v3141_v63 = vpop.xlane.xlu1 %3140 }
 0x9c7   : > { %3303 = vrot.lane.b32.xlu1 %v5898_v3, %s5289_s17  ;;  %v3163_v1 = vsub.f32 %v2618_v24, %v3141_v63 }
 0x9c9   : > { %v3171_v3 = vmul.f32 1.442695, %v3163_v1 }
 0x9ca   : > { %v3144_v62 = vpop.xlane.xlu0 %3143 }
 0x9cb   : > { %3379 = vrot.lane.b32.xlu1 %v5921_v10, %s5289_s17  ;;  %v3164_v0 = vsub.f32 %v2692_v29, %v3144_v62 }
 0x9cd   : > { %v3173_v4 = vmul.f32 1.442695, %v3164_v0 }
 0x9ce   : > { %3227 = vrot.lane.b32.xlu0 %v5904_v5, %s5289_s17 }
 0x9cf   : > { %3531 = vrot.lane.b32.xlu1 %v5946_v14, %s5289_s17  ;;  %4991 = vpow2.f32 %v3173_v4 }
 0x9d0   : > { %4993 = vpow2.f32 %v3171_v3 }
 0x9d2   : > { %3455 = vrot.lane.b32.xlu0 %v5937_v13, %s5289_s17 }
 0x9d6   : > { %3607 = vrot.lane.b32.xlu0 %v5917_v6, %s5289_s17 }
 0x9dc   : > { %v6000_v10 = vpop.eup %4991 }
 0x9dd   : > { %v6002_v5 = vpop.eup %4993  ;;  %v3190_v11 = vsel %vm901_vm13, %v6000_v10, 0.0 }
 0x9de   : > { %v3187_v12 = vsel %vm901_vm13, %v6002_v5, 0.0 }
 0x9f3   : > { %3191 = vadd.xlane.f32.xlu1 %v3190_v11 }
 0x9f5   : > { %3188 = vadd.xlane.f32.xlu0 %v3187_v12 }
 0xa37   : > { %v3150_v6 = vpop.xlane.xlu1 %3149 }
 0xa38   : > { %v3166_v13 = vsub.f32 %v2840_v35, %v3150_v6 }
 0xa39   : > { %v3147_v14 = vpop.xlane.xlu0 %3146 }
 0xa3a   : > { %v3177_v16 = vmul.f32 1.442695, %v3166_v13  ;;  %v3165_v17 = vsub.f32 %v2766_v39, %v3147_v14 }
 0xa3b   : > { %v3156_v18 = vpop.xlane.xlu1 %3155 }
 0xa3c   : > { %4995 = vpow2.f32 %v3177_v16  ;;  %v3175_v19 = vmul.f32 1.442695, %v3165_v17  ;;  %v3168_v20 = vsub.f32 %v2988_v48, %v3156_v18  ;;  %v3868_v18 = vld [vmem:[%s5602_s22 + $0x18] sm:$0xff] }
 0xa3d   : > { %v3153_v21 = vpop.xlane.xlu0 %3152 }
 0xa3e   : > { %4997 = vpow2.f32 %v3175_v19  ;;  %v3181_v22 = vmul.f32 1.442695, %v3168_v20  ;;  %v3167_v23 = vsub.f32 %v2914_v44, %v3153_v21  ;;  %v3867_v19 = vld [vmem:[%s5602_s22 + $0x10] sm:$0xff]  ;;  %v3866_v20 = vld [vmem:[%s5602_s22 + $0x8] sm:$0xff] }
 0xa3f   : > { %v3162_v24 = vpop.xlane.xlu1 %3161 }
 0xa40   : > { %4999 = vpow2.f32 %v3181_v22  ;;  %v3179_v25 = vmul.f32 1.442695, %v3167_v23  ;;  %v3170_v26 = vsub.f32 %v3136_v54, %v3162_v24 }
 0xa41   : > { %v3159_v27 = vpop.xlane.xlu0 %3158 }
 0xa42   : > { %5001 = vpow2.f32 %v3179_v25  ;;  %v3185_v28 = vmul.f32 1.442695, %v3170_v26  ;;  %v3169_v29 = vsub.f32 %v3062_v58, %v3159_v27 }
 0xa43   : > { %v3304_v30 = vpop.permute.xlu1 %3303 }
 0xa44   : > { %5003 = vpow2.f32 %v3185_v28  ;;  %v3183_v31 = vmul.f32 1.442695, %v3169_v29  ;;  %4773 = vmatpush3.msra.mxu1 %v3304_v30 }
 0xa45   : > { %v3228_v32 = vpop.permute.xlu0 %3227  ;;  %4782 = vmatprep.subr.mxu1 %v5286_v2 }
 0xa46   : > { %5005 = vpow2.f32 %v3183_v31  ;;  %4768 = vmatpush3.msra.mxu0 %v3228_v32 }
 0xa47   : > { %4777 = vmatprep.subr.mxu0 %v5286_v2  ;;  %v3380_v49 = vpop.permute.xlu1 %3379 }
 0xa49   : > { %v4996_v33 = vpop.eup %4995  ;;  %v3456_v50 = vpop.permute.xlu0 %3455 }
 0xa4a   : > { %v3196_v34 = vsel %vm901_vm13, %v4996_v33, 0.0 }
 0xa4b   : > { %v4998_v35 = vpop.eup %4997  ;;  %3197 = vadd.xlane.f32.xlu1 %v3196_v34  ;;  %v3532_v7 = vpop.permute.xlu1 %3531 }
 0xa4c   : > { %v3193_v36 = vsel %vm901_vm13, %v4998_v35, 0.0 }
 0xa4d   : > { %v5000_v37 = vpop.eup %4999  ;;  %3194 = vadd.xlane.f32.xlu0 %v3193_v36  ;;  %v3608_v45 = vpop.permute.xlu0 %3607 }
 0xa4e   : > { %v3202_v38 = vsel %vm901_vm13, %v5000_v37, 0.0 }
 0xa4f   : > { %v5002_v39 = vpop.eup %5001  ;;  %3203 = vadd.xlane.f32.xlu1 %v3202_v38 }
 0xa50   : > { %v3199_v40 = vsel %vm901_vm13, %v5002_v39, 0.0 }
 0xa51   : > { %v6014_v41 = vpop.eup %5003  ;;  %3200 = vadd.xlane.f32.xlu0 %v3199_v40 }
 0xa52   : > { %v3208_v42 = vsel %vm901_vm13, %v6014_v41, 0.0 }
 0xa53   : > { %v6018_v46 = vpop.eup %5005  ;;  %3209 = vadd.xlane.f32.xlu1 %v3208_v42 }
 0xa54   : > { %v3205_v48 = vsel %vm901_vm13, %v6018_v46, 0.0 }
 0xa55   : > { %3206 = vadd.xlane.f32.xlu0 %v3205_v48 }
 0xa64   : > { %3683 = vrot.lane.b32.xlu1 %v5948_v15, %s5289_s17 }
 0xa6b   : > { %3759 = vrot.lane.b32.xlu0 %v5919_v9, %s5289_s17 }
 0xa7c   : > { %v3192_v44 = vpop.xlane.xlu1 %3191 }
 0xa7d   : > { %5007 = vrcp.f32 %v3192_v44 }
 0xa7e   : > { %v3189_v8 = vpop.xlane.xlu0 %3188 }
 0xa7f   : > { %5009 = vrcp.f32 %v3189_v8 }
 0xa8a   : > { %v5008_v51 = vpop.eup %5007 }
 0xa8b   : > { %v3220_v52 = vmul.f32 %v5008_v51, %v6000_v10 }
 0xa8c   : > { %v5010_v53 = vpop.eup %5009 }
 0xa8d   : > { %4775 = vmatmul.mubr.msk.f32.vlgmr.msra.gmra.mxu1 %vm901_vm13, %v3220_v52  ;;  %v3219_v54 = vmul.f32 %v5010_v53, %v6002_v5  ;;  %v3971_v53 = vld [vmem:[%s5604_s3 + $0x18] sm:$0xff] }
 0xa8e   : > { %4783 = vmatpush3.msra.mxu1 %v3456_v50  ;;  %4784 = vmatprep.mubr.msk.f32.mxu1 %vm5287_vm12, %v5286_v2 }
 0xa8f   : > { %4770 = vmatmul.mubr.msk.f32.vlgmr.msra.gmra.mxu0 %vm901_vm13, %v3219_v54  ;;  %4792 = vmatprep.subr.mxu1 %v5286_v2  ;;  %v3969_v54 = vld [vmem:[%s5604_s3 + $0x8] sm:$0xff] }
 0xa90   : > { %4778 = vmatpush3.msra.mxu0 %v3380_v49  ;;  %4779 = vmatprep.mubr.msk.f32.mxu0 %vm5287_vm12, %v5286_v2 }
 0xa91   : > { %4787 = vmatprep.subr.mxu0 %v5286_v2 }
 0xad4   : > { %v3198_v9 = vpop.xlane.xlu1 %3197 }
 0xad5   : > { %5011 = vrcp.f32 %v3198_v9 }
 0xad6   : > { %v3195_v15 = vpop.xlane.xlu0 %3194 }
 0xad7   : > { %5013 = vrcp.f32 %v3195_v15 }
 0xad8   : > { %v3204_v55 = vpop.xlane.xlu1 %3203 }
 0xad9   : > { %5015 = vrcp.f32 %v3204_v55 }
 0xada   : > { %v3201_v56 = vpop.xlane.xlu0 %3200 }
 0xadb   : > { %5017 = vrcp.f32 %v3201_v56 }
 0xadc   : > { %v3210_v57 = vpop.xlane.xlu1 %3209 }
 0xadd   : > { %5019 = vrcp.f32 %v3210_v57 }
 0xade   : > { %v3207_v58 = vpop.xlane.xlu0 %3206 }
 0xadf   : > { %5021 = vrcp.f32 %v3207_v58 }
 0xae0   : > { %v3684_v5 = vpop.permute.xlu1 %3683 }
 0xae2   : > { %v5012_v59 = vpop.eup %5011  ;;  %v3760_v4 = vpop.permute.xlu0 %3759 }
 0xae3   : > { %v3222_v60 = vmul.f32 %v5012_v59, %v4996_v33 }
 0xae4   : > { %v5014_v61 = vpop.eup %5013 }
 0xae5   : > { %4785 = vmatmul.mubr.msk.f32.vlgmr.msra.gmra.mxu1 %vm901_vm13, %v3222_v60  ;;  %v3221_v62 = vmul.f32 %v5014_v61, %v4998_v35 }
 0xae6   : > { %v5016_v63 = vpop.eup %5015  ;;  %4793 = vmatpush3.msra.mxu1 %v3608_v45  ;;  %4794 = vmatprep.mubr.msk.f32.mxu1 %vm5287_vm12, %v5286_v2 }
 0xae7   : > { %4780 = vmatmul.mubr.msk.f32.vlgmr.msra.gmra.mxu0 %vm901_vm13, %v3221_v62  ;;  %4802 = vmatprep.subr.mxu1 %v5286_v2  ;;  %v3224_v0 = vmul.f32 %v5016_v63, %v5000_v37  ;;  %v4088_v63 = vld [vmem:[%s5630_s14 + $0x38] sm:$0xff] }
 0xae8   : > { %v5018_v1 = vpop.eup %5017  ;;  %4788 = vmatpush3.msra.mxu0 %v3532_v7  ;;  %4789 = vmatprep.mubr.msk.f32.mxu0 %vm5287_vm12, %v5286_v2 }
 0xae9   : > { %4795 = vmatmul.mubr.msk.f32.vlgmr.msra.gmra.mxu1 %vm901_vm13, %v3224_v0  ;;  %4797 = vmatprep.subr.mxu0 %v5286_v2  ;;  %v3223_v3 = vmul.f32 %v5018_v1, %v5002_v39  ;;  %v4087_v0 = vld [vmem:[%s5630_s14 + $0x30] sm:$0xff]  ;;  %v4086_v1 = vld [vmem:[%s5630_s14 + $0x28] sm:$0xff] }
 0xaea   : > { %v5020_v10 = vpop.eup %5019  ;;  %4803 = vmatpush3.msra.mxu1 %v3760_v4  ;;  %4804 = vmatprep.mubr.msk.f32.mxu1 %vm5287_vm12, %v5286_v2  ;;  %v4085_v4 = vld [vmem:[%s5630_s14 + $0x20] sm:$0xff] }
 0xaeb   : > { %4790 = vmatmul.mubr.msk.f32.vlgmr.msra.gmra.mxu0 %vm901_vm13, %v3223_v3  ;;  %v3226_v11 = vmul.f32 %v5020_v10, %v6014_v41  ;;  %4818 = vmatprep.subr.mxu1 %v3971_v53  ;;  %v4084_v3 = vld [vmem:[%s5630_s14 + $0x18] sm:$0xff]  ;;  %v4083_v10 = vld [vmem:[%s5630_s14 + $0x10] sm:$0xff] }
 0xaec   : > { %v5022_v12 = vpop.eup %5021  ;;  %4798 = vmatpush3.msra.mxu0 %v3684_v5  ;;  %4799 = vmatprep.mubr.msk.f32.mxu0 %vm5287_vm12, %v5286_v2  ;;  %v3865_v2 = vld [vmem:[%s5602_s22] sm:$0xff]  ;;  %v4082_v5 = vld [vmem:[%s5630_s14 + $0x8] sm:$0xff] }
 0xaed   : > { %4805 = vmatmul.mubr.msk.f32.vlgmr.msra.gmra.mxu1 %vm901_vm13, %v3226_v11  ;;  %v3225_v6 = vmul.f32 %v5022_v12, %v6018_v46  ;;  %4807 = vmatprep.subr.mxu0 %v3868_v18  ;;  %v4081_v11 = vld [vmem:[%s5630_s14] sm:$0xff] }
 0xaee   : > { %4819 = vmatpush3.msra.mxu1 %v3971_v53 }
 0xaef   : > { %4800 = vmatmul.mubr.msk.f32.vlgmr.msra.gmra.mxu0 %vm901_vm13, %v3225_v6 }
 0xaf0   : > { %4808 = vmatpush3.msra.mxu0 %v3868_v18 }
 0xaf1   : > { %4809 = vmatprep.subr.mxu0 %v3867_v19 }
 0xaf2   : > { %4810 = vmatpush3.msra.mxu0 %v3867_v19 }
 0xaf3   : > { %4811 = vmatprep.subr.mxu0 %v3866_v20 }
 0xaf4   : > { %4812 = vmatpush3.msra.mxu0 %v3866_v20 }
 0xaf5   : > { %4813 = vmatprep.subr.mxu0 %v3865_v2 }
 0xaf6   : > { %4814 = vmatpush3.msra.mxu0 %v3865_v2 }
 0xaf7   : > { %4829 = vmatprep.subr.mxu0 %v4088_v63 }
 0xb4d   : > { %v3375_v13 = vpop.f32.mrf.mxu1 }
 0xb4f   : > { %v3299_v14 = vpop.f32.mrf.mxu0  ;;  %v4776_v16 = vpop.f32.mrf.mxu1 }
 0xb51   : > { %v4771_v17 = vpop.f32.mrf.mxu0 }
 0xba5   : > { %v3527_v21 = vpop.f32.mrf.mxu1 }
 0xba6   : > { %3839 = vrot.lane.b32.xlu0 %v3527_v21, %s5291_s0 }
 0xba7   : > { %v3451_v22 = vpop.f32.mrf.mxu0  ;;  %v4786_v23 = vpop.f32.mrf.mxu1 }
 0xba8   : > { %3837 = vrot.lane.b32.xlu1 %v3451_v22, %s5291_s0 }
 0xba9   : > { %v4781_v24 = vpop.f32.mrf.mxu0  ;;  %v3679_v25 = vpop.f32.mrf.mxu1 }
 0xbaa   : > { %3847 = vrot.lane.b32.xlu0 %v3679_v25, %s5292_s23 }
 0xbab   : > { %v3603_v26 = vpop.f32.mrf.mxu0  ;;  %v4796_v27 = vpop.f32.mrf.mxu1 }
 0xbac   : > { %3845 = vrot.lane.b32.xlu1 %v3603_v26, %s5292_s23 }
 0xbad   : > { %v4791_v28 = vpop.f32.mrf.mxu0  ;;  %v3831_v29 = vpop.f32.mrf.mxu1 }
 0xbae   : > { %3855 = vrot.lane.b32.xlu0 %v3831_v29, %s5293_s21 }
 0xbaf   : > { %v3755_v30 = vpop.f32.mrf.mxu0  ;;  %v4806_v31 = vpop.f32.mrf.mxu1 }
 0xbb0   : > { %3853 = vrot.lane.b32.xlu1 %v3755_v30, %s5293_s21 }
 0xbb1   : > { %v4801_v32 = vpop.f32.mrf.mxu0 }
 0xc18   : > { %v3840_v33 = vpop.permute.xlu0 %3839 }
 0xc19   : > { %v3860_v39 = vsel %vm901_vm13, %v3375_v13, %v3840_v33 }
 0xc1a   : > { %v3838_v34 = vpop.permute.xlu1 %3837 }
 0xc1b   : > { %v3859_v37 = vsel %vm901_vm13, %v3299_v14, %v3838_v34 }
 0xc1c   : > { %v3848_v35 = vpop.permute.xlu0 %3847 }
 0xc1d   : > { %v3862_v42 = vsel %vm2230_vm14, %v3860_v39, %v3848_v35 }
 0xc1e   : > { %v3846_v36 = vpop.permute.xlu1 %3845 }
 0xc1f   : > { %v3861_v40 = vsel %vm2230_vm14, %v3859_v37, %v3846_v36 }
 0xc20   : > { %v3856_v38 = vpop.permute.xlu0 %3855 }
 0xc21   : > { %v3864_v48 = vsel %vm2233_vm15, %v3862_v42, %v3856_v38 }
 0xc22   : > { %v3854_v41 = vpop.permute.xlu1 %3853 }
 0xc23   : > { %v3863_v46 = vsel %vm2233_vm15, %v3861_v40, %v3854_v41 }
 0xc24   : > { %4815 = vmatprep.mubr.msk.f32.mxu0 %vm776_vm11, %v3863_v46 }
 0xc25   : > { %4816 = vmatmul.mubr.msk.f32.vlgmr.msra.gmra.mxu0 %vm776_vm11, %v3864_v48 }
 0xc26   : > { %4830 = vmatpush3.msra.mxu0 %v4088_v63 }
 0xc27   : > { %4831 = vmatprep.subr.mxu0 %v4087_v0 }
 0xc28   : > { %4832 = vmatpush3.msra.mxu0 %v4087_v0 }
 0xc29   : > { %4833 = vmatprep.subr.mxu0 %v4086_v1 }
 0xc2a   : > { %4834 = vmatpush3.msra.mxu0 %v4086_v1 }
 0xc2b   : > { %4835 = vmatprep.subr.mxu0 %v4085_v4 }
 0xc2c   : > { %4836 = vmatpush3.msra.mxu0 %v4085_v4 }
 0xc2d   : > { %4837 = vmatprep.subr.mxu0 %v4084_v3 }
 0xc2e   : > { %4838 = vmatpush3.msra.mxu0 %v4084_v3 }
 0xc2f   : > { %4839 = vmatprep.subr.mxu0 %v4083_v10 }
 0xc30   : > { %4840 = vmatpush3.msra.mxu0 %v4083_v10 }
 0xc31   : > { %4841 = vmatprep.subr.mxu0 %v4082_v5 }
 0xc32   : > { %4842 = vmatpush3.msra.mxu0 %v4082_v5 }
 0xc33   : > { %4843 = vmatprep.subr.mxu0 %v4081_v11 }
 0xc34   : > { %4844 = vmatpush3.msra.mxu0 %v4081_v11 }
 0xce5   : > { %v4817_v49 = vpop.f32.mrf.mxu0 }
 0xce6   : > { %v6073_v50 = vadd.f32 %v4817_v49, %v5868_v43  ;;  %v3970_v43 = vld [vmem:[%s5604_s3 + $0x10] sm:$0xff] }
 0xce7   : > { %v3941_v7 = vpop.f32.mrf.mxu0  ;;  %4820 = vmatprep.subr.mxu1 %v3970_v43 }
 0xce8   : > { %v6076_v45 = vadd.f32 %v3941_v7, %v5871_v47  ;;  %v3953_v44 = vmul.f32 %v6073_v50, %v6073_v50  ;;  %4821 = vmatpush3.msra.mxu1 %v3970_v43  ;;  %v3968_v47 = vld [vmem:[%s5604_s3] sm:$0xff]  ;;  %s6200_s3 = sld [smem:[#allocation28_spill]] (!%p4480_p8) }
 0xce9   : > { %4822 = vmatprep.subr.mxu1 %v3969_v54 }
 0xcea   : > { %v3957_v8 = vsel %vm776_vm11, %v3953_v44, 0.0  ;;  %v3952_v51 = vmul.f32 %v6076_v45, %v6076_v45  ;;  %4823 = vmatpush3.msra.mxu1 %v3969_v54 }
 0xceb   : > { %3958 = vadd.xlane.f32.xlu0 %v3957_v8  ;;  %4824 = vmatprep.subr.mxu1 %v3968_v47 }
 0xcec   : > { %v3954_v52 = vsel %vm776_vm11, %v3952_v51, 0.0  ;;  %4825 = vmatpush3.msra.mxu1 %v3968_v47 }
 0xced   : > { %3955 = vadd.xlane.f32.xlu1 %v3954_v52 }
 0xd74   : > { %v3959_v9 = vpop.xlane.xlu0 %3958 }
 0xd75   : > { %v3961_v15 = vmul.f32 0.03125, %v3959_v9 }
 0xd76   : > { %v3956_v55 = vpop.xlane.xlu1 %3955 }
 0xd77   : > { %v3963_v56 = vadd.f32 1e-06, %v3961_v15  ;;  %v3960_v57 = vmul.f32 0.03125, %v3956_v55 }
 0xd79   : > { %v3962_v58 = vadd.f32 1e-06, %v3960_v57  ;;  %5023 = vrsqrt.f32 %v3963_v56 }
 0xd7b   : > { %5025 = vrsqrt.f32 %v3962_v58 }
 0xd86   : > { %v5024_v59 = vpop.eup %5023 }
 0xd87   : > { %v3967_v62 = vmul.f32 %v5024_v59, %v6073_v50 }
 0xd88   : > { %v5026_v60 = vpop.eup %5025 }
 0xd89   : > { %v3966_v61 = vmul.f32 %v5026_v60, %v6076_v45 }
 0xd8b   : > { %4826 = vmatprep.mubr.msk.f32.mxu1 %vm776_vm11, %v3966_v61 }
 0xd8c   : > { %4827 = vmatmul.mubr.msk.f32.vlgmr.msra.gmra.mxu1 %vm776_vm11, %v3967_v62 }
 0xe4c   : > { %v4828_v12 = vpop.f32.mrf.mxu1 }
 0xe4d   : > { %4075 = vrot.lane.b32.xlu1 %v4828_v12, %s5290_s16  ;;  %v4056_v14 = vmul.f32 0.044715, %v4828_v12  ;;  %v4054_v28 = vmul.f32 0.5, %v4828_v12 }
 0xe4e   : > { %v4044_v6 = vpop.f32.mrf.mxu1 }
 0xe4f   : > { %4073 = vrot.lane.b32.xlu0 %v4044_v6, %s5290_s16  ;;  %v4055_v13 = vmul.f32 0.044715, %v4044_v6  ;;  %v4058_v17 = vmul.f32 %v4828_v12, %v4056_v14  ;;  %v4053_v27 = vmul.f32 0.5, %v4044_v6 }
 0xe51   : > { %v4057_v16 = vmul.f32 %v4055_v13, %v4044_v6  ;;  %v4060_v19 = vmul.f32 %v4828_v12, %v4058_v17 }
 0xe53   : > { %v4059_v18 = vmul.f32 %v4057_v16, %v4044_v6  ;;  %v4062_v2 = vadd.f32 %v4828_v12, %v4060_v19 }
 0xe55   : > { %v4061_v20 = vadd.f32 %v4059_v18, %v4044_v6  ;;  %v4064_v22 = vmul.f32 0.7978846, %v4062_v2 }
 0xe57   : > { %v4063_v21 = vmul.f32 0.7978846, %v4061_v20 }
 0xe59   : > { %5027 = vtanh.f32 %v4063_v21 }
 0xe5a   : > { %5029 = vtanh.f32 %v4064_v22 }
 0xe66   : > { %v5028_v23 = vpop.eup %5027 }
 0xe67   : > { %v5030_v24 = vpop.eup %5029  ;;  %v4067_v25 = vadd.f32 1.0, %v5028_v23 }
 0xe68   : > { %v4068_v26 = vadd.f32 1.0, %v5030_v24 }
 0xe69   : > { %v4069_v30 = vmul.f32 %v4067_v25, %v4053_v27 }
 0xe6a   : > { %v4070_v31 = vmul.f32 %v4068_v26, %v4054_v28 }
 0xebf   : > { %v4076_v29 = vpop.permute.xlu1 %4075 }
 0xec0   : > { %v4080_v34 = vmul.f32 %v4076_v29, %v4070_v31 }
 0xec1   : > { %v4074_v32 = vpop.permute.xlu0 %4073 }
 0xec2   : > { %v4079_v33 = vmul.f32 %v4074_v32, %v4069_v30 }
 0xec4   : > { %4845 = vmatprep.mubr.msk.f32.mxu0 %vm4089_vm0, %v4079_v33 }
 0xec5   : > { %4846 = vmatmul.mubr.msk.f32.vlgmr.msra.gmra.mxu0 %vm4089_vm0, %v4080_v34 }
 0xf85   : > { %v4847_v35 = vpop.f32.mrf.mxu0 }
 0xf86   : > { %v4172_v36 = vadd.f32 %v4847_v35, %v6073_v50  ;;  %4178 = sbr.rel (%p4480_p8) target bundleno = 4147 (0x1033), region = 104 }
 0xf87   : > { %v4162_v37 = vpop.f32.mrf.mxu0 }
 0xf88   : > { %4174 = vst.msk [vmem:[#allocation2 + $0x8] sm:$0xff] %vm776_vm11, %v4172_v36  ;;  %v4171_v38 = vadd.f32 %v4162_v37, %v6076_v45 }
 0xf8a   : > { %4173 = vst.msk [vmem:[#allocation2] sm:$0xff] %vm776_vm11, %v4171_v38 }
 0xf8b   : > { %v4179_v39 = vmul.f32 %v4171_v38, %v4171_v38  ;;  %v4180_v40 = vmul.f32 %v4172_v36, %v4172_v36  ;;  %v4481_v8 = vld [vmem:[%s6200_s3] ss:$0 sm:$0xff] }
 0xf8d   : > { %v4181_v41 = vsel %vm776_vm11, %v4179_v39, 0.0  ;;  %v4184_v42 = vsel %vm776_vm11, %v4180_v40, 0.0 }
 0xf8e   : > { %4182 = vadd.xlane.f32.xlu0 %v4181_v41 }
 0xf92   : > { %4185 = vadd.xlane.f32.xlu0 %v4184_v42 }
0x1017   : > { %v4183_v46 = vpop.xlane.xlu0 %4182 }
0x1018   : > { %v4187_v48 = vmul.f32 0.03125, %v4183_v46 }
0x101a   : > { %v4189_v49 = vadd.f32 1e-06, %v4187_v48 }
0x101b   : > { %v4186_v50 = vpop.xlane.xlu0 %4185 }
0x101c   : > { %5031 = vrsqrt.f32 %v4189_v49  ;;  %v4188_v7 = vmul.f32 0.03125, %v4186_v50 }
0x101e   : > { %v4190_v45 = vadd.f32 1e-06, %v4188_v7 }
0x1020   : > { %5033 = vrsqrt.f32 %v4190_v45 }
0x1029   : > { %v5032_v44 = vpop.eup %5031 }
0x102a   : > { %v4193_v51 = vmul.f32 %v5032_v44, %v4171_v38 }
0x102c   : > { %v4202_v52 = vmul.f32 %v4481_v8, %v4193_v51 }
0x102d   : > { %v5034_v53 = vpop.eup %5033 }
0x102e   : > { %4204 = vst.msk [vmem:[#allocation16] sm:$0xff] %vm776_vm11, %v4202_v52  ;;  %v4194_v43 = vmul.f32 %v5034_v53, %v4172_v36 }
0x1030   : > { %v4203_v54 = vmul.f32 %v4481_v8, %v4194_v43 }
0x1032   : > { %4205 = vst.msk [vmem:[#allocation16 + $0x8] sm:$0xff] %vm776_vm11, %v4203_v54 }
0x1033 PF: > { %p4897_p10 = scmp.eq.s32.totalorder %s5385_s29, 1  ;;  %s5294_s25 = smov [#allocation16]  }
0x1034   : > { %s4212_s18 = sshll.u32 %s5294_s25, 4  ;;  %s4213_s18 = int_to_ptr.vmem [resolvable:$true] %s4212_s18 }
0x1035   : > { %s5197_s20 = scalar_lea.vmem %s4213_s18, 256  ;;  %p5204_p11 = scmp.lt.s32.totalorder %s4213_s18, %s4213_s18 }
0x1036   : > { %p5198_p12 = scmp.ne.s32.totalorder %s4213_s18, %s5197_s20  ;;  %p5205_p2 = scmp.lt.s32.totalorder %s5197_s20, %s5197_s20 }
0x1038   : > { %p5199_p0 = pnand %p5198_p12, %p4897_p10  ;;  %p5206_p1 = por %p5205_p2, %p5204_p11 }
0x103a   : > { %p5200_p7 = pneg %p5199_p0 }
0x103c   : > { %p5207_p4 = pnand %p5206_p1, %p5200_p7 }
0x103e   : > { %5210 = shalt.err (!%p5207_p4)
}
0x103f   : > { %s5295_s14 = smov 128   ;;  %s6201_s15 = sld [smem:[#allocation30_spill]] }
0x1045   : > { %4867 = dma.vmem_to_hbm [thread:$0]  (%p4897_p10), %s4213_s18, 256, %s6201_s15, [#allocation7], %s5295_s14, %s5295_s14, %s5291_s0  }
0x1046   : > { %5254 = dma.done.wait (%p4897_p10), [#allocation7], 256  }
0x1047   : > { %5256 = vsyncadd (%p4897_p10), [#allocation7], 4294967040 }
0x1048 PF: > { %s6202_s28 = sld [smem:[#allocation22_spill]]  ;;  %s6204_s25 = smov %s5263_s26 }
0x1049   : > { %s6203_s24 = sld [smem:[#allocation23_spill]]  ;;  %s6205_s26 = smov %s5267_s27 }
0x104e   : > { %p29_p5 = scmp.ge.s32.totalorder %s6202_s28, 4  }
0x104f   : > { %s6206_s27 = smov %s6203_s24 }
0x1050   :  { %31 = sbr.rel (!%p29_p5) target bundleno = 16 (0x10), region = 166 }
0x1055   :  { %4228 = vsyncpa [#allocation6], 1 }
0x1056   :  { %4230 = vsyncpa [#allocation6 + $0x1], 1 }
0x1057   :  { %4231 = vsyncpa [#allocation9], 1 }
0x1058   :  { %4232 = vsyncpa [#allocation12], 1 }
0x1059   :  { %4234 = vsyncpa [#allocation12 + $0x1], 1 }
0x105a   :  { %4235 = vsyncpa [#allocation15], 1 }
0x105b   :  { %4237 = vsyncpa [#allocation15 + $0x1], 1 }
0x105c   :  { %4238 = vsyncpa [#allocation7], 1 }
0x105d   :  { %4240 = vsyncpa [#allocation7 + $0x1], 1 }

</bundles_post_ra>
